<compile_context>
chip_gen: v5e
topology: v5e:2x2
jax: 0.10.0
libtpu: 0.0.40
codegen_flags: <defaults>
</compile_context>

<pallas_src>
import math

import jax
import jax.numpy as jnp
from jax import lax
from jax.experimental import pallas as pl
from jax.experimental.pallas import tpu as pltpu

# ----------------------------- model config (small) -----------------------------
B = 2            # batch
C_IN = 4         # input channels
IMG = 16         # image H = W
PATCH = 8        # patch size  -> Np = (16/8)^2 = 4 patches
EMBED = 32       # embed dim
HEADS = 4
HEAD_DIM = EMBED // HEADS
HIDDEN = 64      # mlp hidden dim
DEPTH = 2
NUM_CLASSES = 10
NP = (IMG // PATCH) ** 2
NTOK = NP + 1            # +cls token
KP = C_IN * PATCH * PATCH
SROWS = B * HEADS * NTOK  # attention rows when heads/batches stacked on sublanes

_INV_SQRT2 = 1.0 / math.sqrt(2.0)

# packed bias/LN-vector matrix layout
VEC_W = 128
_VROWS_PER_BLOCK = 8      # n1g, n1b, qkv_b, proj_b, n2g, n2b, fc1_b, fc2_b
_FINAL_BASE = DEPTH * _VROWS_PER_BLOCK   # norm_g, norm_b, head_b


# ----------------------------- fused Pallas kernel -----------------------------
def _fused_vit_kernel(xp_ref, patchw_ref, tmpl_ref, vecs_ref, qkvw_ref,
                      projw_ref, fc1w_ref, fc2w_ref, headw_ref, mask_ref,
                      out_ref):
    """Single-invocation fused ViT forward.

    xp_ref    : (B*NTOK, KP)  patchified pixels; zero row at each cls slot.
    patchw_ref: (KP, E)       conv weight as matmul, patch_ada folded in.
    tmpl_ref  : (B*NTOK, E)   per-row additive template (cls+pos0 ; b*ada+pos).
    vecs_ref  : (24, 128)     packed LN gains/biases + folded linear biases.
    qkvw_ref  : (DEPTH, E, 3E)   postsynapse-folded, pre-transposed weights.
    projw_ref : (DEPTH, E, E)
    fc1w_ref  : (DEPTH, E, HIDDEN)
    fc2w_ref  : (DEPTH, HIDDEN, E)
    headw_ref : (E, NUM_CLASSES)
    mask_ref  : (SROWS, SROWS)   block-diagonal 0 / -1e30 attention mask.
    out_ref   : (B, NUM_CLASSES) logits.
    """

    def vrow(r, n):                       # one packed (1, n) parameter vector
        return vecs_ref[r:r + 1, 0:n]

    def layernorm(v, g, b):
        mu = jnp.mean(v, axis=-1, keepdims=True)
        var = jnp.mean((v - mu) ** 2, axis=-1, keepdims=True)
        return (v - mu) * lax.rsqrt(var + 1e-5) * g + b

    def stack_heads(m, col0):
        # (B*NTOK, 3E) -> (B*HEADS*NTOK, HEAD_DIM), rows ordered (batch, head, tok)
        parts = []
        for b in range(B):
            rows = m[b * NTOK:(b + 1) * NTOK, :]
            for h in range(HEADS):
                parts.append(rows[:, col0 + h * HEAD_DIM:col0 + (h + 1) * HEAD_DIM])
        return jnp.concatenate(parts, axis=0)

    def unstack_heads(m):
        # (B*HEADS*NTOK, HEAD_DIM) -> (B*NTOK, E) with heads concatenated on lanes
        outs = []
        for b in range(B):
            outs.append(jnp.concatenate(
                [m[(b * HEADS + h) * NTOK:(b * HEADS + h + 1) * NTOK, :]
                 for h in range(HEADS)], axis=1))
        return jnp.concatenate(outs, axis=0)

    attn_mask = mask_ref[...]                    # hoisted: loaded once
    attn_scale = HEAD_DIM ** -0.5

    # ---- patch embed (conv-as-matmul); ada folded into W, bias*ada+pos+cls in tmpl ----
    x = (jnp.dot(xp_ref[...], patchw_ref[...], preferred_element_type=jnp.float32)
         + tmpl_ref[...])                                               # (B*NTOK, E)

    # ---- transformer blocks (dense path batched over all B*NTOK rows) ----
    for d in range(DEPTH):
        base = _VROWS_PER_BLOCK * d
        n1g, n1b = vrow(base + 0, EMBED), vrow(base + 1, EMBED)
        qkv_b = vrow(base + 2, 3 * EMBED)
        pj_b = vrow(base + 3, EMBED)
        n2g, n2b = vrow(base + 4, EMBED), vrow(base + 5, EMBED)
        f1b = vrow(base + 6, HIDDEN)
        f2b = vrow(base + 7, EMBED)

        # LN1 + qkv (synapse_plasticity 'nt': postsynapse folded into W/b)
        h = layernorm(x, n1g, n1b)
        qkv = (jnp.dot(h, qkvw_ref[d], preferred_element_type=jnp.float32)
               + qkv_b)                                                 # (B*NTOK, 3E)

        # attention: all batches & heads in ONE score + ONE PV matmul
        q_s = stack_heads(qkv, 0)                                       # (SROWS, HD)
        k_s = stack_heads(qkv, EMBED)
        v_s = stack_heads(qkv, 2 * EMBED)
        s = lax.dot_general(q_s, k_s, (((1,), (1,)), ((), ())),
                            preferred_element_type=jnp.float32)
        s = s * attn_scale + attn_mask                                  # block-diag mask
        s = s - jnp.max(s, axis=-1, keepdims=True)
        p = jnp.exp(s)
        p = p * pl.reciprocal(jnp.sum(p, axis=-1, keepdims=True), approx=True)
        o_s = jnp.dot(p, v_s, preferred_element_type=jnp.float32)       # (SROWS, HD)

        # head concat + single proj matmul (postsynapse folded) + residual
        attn_out = unstack_heads(o_s)                                   # (B*NTOK, E)
        x = x + (jnp.dot(attn_out, projw_ref[d],
                         preferred_element_type=jnp.float32) + pj_b)

        # LN2 + MLP (fc1/fc2 postsynapse folded) + exact GELU + residual
        h = layernorm(x, n2g, n2b)
        h = (jnp.dot(h, fc1w_ref[d], preferred_element_type=jnp.float32) + f1b)
        h = 0.5 * h * (1.0 + lax.erf(h * _INV_SQRT2))                   # matches nn.GELU
        x = x + (jnp.dot(h, fc2w_ref[d], preferred_element_type=jnp.float32) + f2b)

    # ---- final norm + token pooling + head (cls rows only) ----
    cls = jnp.concatenate([x[b * NTOK:b * NTOK + 1, :] for b in range(B)], axis=0)
    h = layernorm(cls, vrow(_FINAL_BASE + 0, EMBED), vrow(_FINAL_BASE + 1, EMBED))
    out_ref[...] = (jnp.dot(h, headw_ref[...], preferred_element_type=jnp.float32)
                    + vrow(_FINAL_BASE + 2, NUM_CLASSES))


# ----------------------------- parameters -----------------------------
def init_params(key):
    def nrm(k, shape, std=0.02):
        return std * jax.random.normal(k, shape, dtype=jnp.float32)

    keys = jax.random.split(key, 8 + DEPTH)
    p = {
        "patch_w": nrm(keys[0], (EMBED, C_IN, PATCH, PATCH)),   # conv weight (out, in, p, p)
        "patch_b": jnp.zeros((EMBED,), jnp.float32),
        "patch_ada": jnp.ones((EMBED,), jnp.float32),           # neurotransmitter(768) analogue
        "cls_token": nrm(keys[1], (1, 1, EMBED)),
        "pos_embed": nrm(keys[2], (1, NTOK, EMBED)),
        "norm_g": jnp.ones((EMBED,), jnp.float32),
        "norm_b": jnp.zeros((EMBED,), jnp.float32),
        "head_w": nrm(keys[3], (NUM_CLASSES, EMBED)),
        "head_b": jnp.zeros((NUM_CLASSES,), jnp.float32),
        "blocks": [],
    }
    for d in range(DEPTH):
        bk = jax.random.split(keys[8 + d], 4)
        p["blocks"].append({
            "norm1_g": jnp.ones((EMBED,), jnp.float32),
            "norm1_b": jnp.zeros((EMBED,), jnp.float32),
            "qkv_w": nrm(bk[0], (3 * EMBED, EMBED)),
            "qkv_b": jnp.zeros((3 * EMBED,), jnp.float32),
            "qkv_post": jnp.ones((3 * EMBED,), jnp.float32),    # postsynapse scale
            "proj_w": nrm(bk[1], (EMBED, EMBED)),
            "proj_b": jnp.zeros((EMBED,), jnp.float32),
            "proj_post": jnp.ones((EMBED,), jnp.float32),
            "norm2_g": jnp.ones((EMBED,), jnp.float32),
            "norm2_b": jnp.zeros((EMBED,), jnp.float32),
            "fc1_w": nrm(bk[2], (HIDDEN, EMBED)),
            "fc1_b": jnp.zeros((HIDDEN,), jnp.float32),
            "fc1_post": jnp.ones((HIDDEN,), jnp.float32),
            "fc2_w": nrm(bk[3], (EMBED, HIDDEN)),
            "fc2_b": jnp.zeros((EMBED,), jnp.float32),
            "fc2_post": jnp.ones((EMBED,), jnp.float32),
        })
    return p


def prepare_params(params):
    """One-time prep: fold postsynapse scales into weights/biases, transpose
    weights to (K, N), pack all small vectors into one (rows, 128) matrix,
    stack per-block weights by type, and precompute the token template and the
    block-diagonal attention mask."""
    E = EMBED

    # patch embed: (xW + b)*ada + pos  ==  x(W·ada) + (b·ada + pos)
    patch_ada = params["patch_ada"].reshape(1, E)
    patch_w = params["patch_w"].reshape(E, KP).T * patch_ada            # (KP, E)
    cls_row = params["cls_token"].reshape(1, E) + params["pos_embed"][0, :1, :]
    patch_rows = (params["patch_b"].reshape(1, E) * patch_ada
                  + params["pos_embed"][0, 1:, :])
    tok_tmpl = jnp.tile(jnp.concatenate([cls_row, patch_rows], axis=0), (B, 1))  # (B*NTOK, E)

    def fold_t(w, post):                       # (out,in)*(out,) -> (in,out)
        return (w * post[:, None]).T

    qkv_w_stk = jnp.stack([fold_t(b_["qkv_w"], b_["qkv_post"]) for b_ in params["blocks"]])
    proj_w_stk = jnp.stack([fold_t(b_["proj_w"], b_["proj_post"]) for b_ in params["blocks"]])
    fc1_w_stk = jnp.stack([fold_t(b_["fc1_w"], b_["fc1_post"]) for b_ in params["blocks"]])
    fc2_w_stk = jnp.stack([fold_t(b_["fc2_w"], b_["fc2_post"]) for b_ in params["blocks"]])
    head_w = params["head_w"].T                                          # (E, NUM_CLASSES)

    def row(v):
        v = v.reshape(-1)
        return jnp.pad(v, (0, VEC_W - v.shape[0])).reshape(1, VEC_W)

    rows = []
    for b_ in params["blocks"]:
        rows += [row(b_["norm1_g"]), row(b_["norm1_b"]),
                 row(b_["qkv_b"] * b_["qkv_post"]),
                 row(b_["proj_b"] * b_["proj_post"]),
                 row(b_["norm2_g"]), row(b_["norm2_b"]),
                 row(b_["fc1_b"] * b_["fc1_post"]),
                 row(b_["fc2_b"] * b_["fc2_post"])]
    rows += [row(params["norm_g"]), row(params["norm_b"]), row(params["head_b"])]
    vecs = jnp.concatenate(rows, axis=0)
    pad = (-vecs.shape[0]) % 8
    if pad:
        vecs = jnp.pad(vecs, ((0, pad), (0, 0)))                         # (24, 128)

    # block-diagonal attention mask over (batch, head) groups of NTOK rows
    gid = jnp.arange(SROWS) // NTOK
    attn_mask = jnp.where(gid[:, None] == gid[None, :], 0.0, -1e30).astype(jnp.float32)

    return (patch_w, tok_tmpl, vecs, qkv_w_stk, proj_w_stk,
            fc1_w_stk, fc2_w_stk, head_w, attn_mask)


# ----------------------------- forward (Adaptation.forward, nt mode) -----------------------------
def adaptation_forward(x_nchw, prepped):
    Bx, Cin, H, W = x_nchw.shape
    hp, wp = H // PATCH, W // PATCH

    # patch_embed.proj: conv2d(kernel=stride=PATCH) == matmul over patch pixels.
    # The patchify reshape/transpose stays in XLA (pure data layout).
    xp = x_nchw.reshape(Bx, Cin, hp, PATCH, wp, PATCH)
    xp = xp.transpose(0, 2, 4, 1, 3, 5).reshape(Bx, hp * wp, KP)
    # Zero row per batch at the cls slot: zero @ W == 0 and the token template
    # supplies cls+pos there, so the kernel never concatenates tokens.
    xp_tok = jnp.concatenate(
        [jnp.zeros((Bx, 1, KP), jnp.float32), xp], axis=1).reshape(Bx * NTOK, KP)

    all_in = (xp_tok,) + tuple(prepped)
    vmem = pltpu.MemorySpace.VMEM
    return pl.pallas_call(
        _fused_vit_kernel,
        out_shape=jax.ShapeDtypeStruct((Bx, NUM_CLASSES), jnp.float32),
        in_specs=[pl.BlockSpec(memory_space=vmem) for _ in all_in],
        out_specs=pl.BlockSpec(memory_space=vmem),
    )(*all_in)


if __name__ == "__main__":
    key = jax.random.PRNGKey(0)
    kx, kp = jax.random.split(key)
    x = jax.random.normal(kx, (B, C_IN, IMG, IMG), dtype=jnp.float32)
    params = init_params(kp)

    prepped = prepare_params(params)          # one-time fold/transpose/pack
    fwd = jax.jit(adaptation_forward)
    out = fwd(x, prepped)
    jax.block_until_ready(out)
    assert out.shape == (B, NUM_CLASSES)
    assert bool(jnp.all(jnp.isfinite(out)))
    print("KERNEL_OK")
</pallas_src>

<mosaic_0001>
module attributes {stable_mosaic.version = 11 : i64} {
  func.func @_fused_vit_kernel(%arg0: memref<10x256xf32, #tpu.memory_space<vmem>>, %arg1: memref<256x32xf32, #tpu.memory_space<vmem>>, %arg2: memref<10x32xf32, #tpu.memory_space<vmem>>, %arg3: memref<24x128xf32, #tpu.memory_space<vmem>>, %arg4: memref<2x32x96xf32, #tpu.memory_space<vmem>>, %arg5: memref<2x32x32xf32, #tpu.memory_space<vmem>>, %arg6: memref<2x32x64xf32, #tpu.memory_space<vmem>>, %arg7: memref<2x64x32xf32, #tpu.memory_space<vmem>>, %arg8: memref<32x10xf32, #tpu.memory_space<vmem>>, %arg9: memref<40x40xf32, #tpu.memory_space<vmem>>, %arg10: memref<2x10xf32, #tpu.memory_space<vmem>>) attributes {dimension_semantics = [], scalar_prefetch = 0 : i64, scratch_operands = 0 : i64, tpu.core_type = #tpu.core_type<tc>} {
    %c0 = arith.constant 0 : index
    %c0_0 = arith.constant 0 : index
    %0 = vector.load %arg9[%c0, %c0_0] : memref<40x40xf32, #tpu.memory_space<vmem>>, vector<40x40xf32>
    %c0_1 = arith.constant 0 : index
    %c0_2 = arith.constant 0 : index
    %1 = vector.load %arg0[%c0_1, %c0_2] : memref<10x256xf32, #tpu.memory_space<vmem>>, vector<10x256xf32>
    %c0_3 = arith.constant 0 : index
    %c0_4 = arith.constant 0 : index
    %2 = vector.load %arg1[%c0_3, %c0_4] : memref<256x32xf32, #tpu.memory_space<vmem>>, vector<256x32xf32>
    %cst = arith.constant dense<0.000000e+00> : vector<10x32xf32>
    %3 = tpu.matmul %1, %2, %cst {dimension_numbers = #tpu.dot_dimension_numbers<[1], [0], [0], [1], [0, 0, 1, 1], [], []>} : vector<10x256xf32>, vector<256x32xf32>, vector<10x32xf32> -> vector<10x32xf32>
    %c0_5 = arith.constant 0 : index
    %c0_6 = arith.constant 0 : index
    %4 = vector.load %arg2[%c0_5, %c0_6] : memref<10x32xf32, #tpu.memory_space<vmem>>, vector<10x32xf32>
    %5 = arith.addf %3, %4 : vector<10x32xf32>
    %c0_7 = arith.constant 0 : index
    %c0_8 = arith.constant 0 : index
    %6 = vector.load %arg3[%c0_7, %c0_8] : memref<24x128xf32, #tpu.memory_space<vmem>>, vector<1x32xf32>
    %c1 = arith.constant 1 : index
    %c0_9 = arith.constant 0 : index
    %7 = vector.load %arg3[%c1, %c0_9] : memref<24x128xf32, #tpu.memory_space<vmem>>, vector<1x32xf32>
    %c2 = arith.constant 2 : index
    %c0_10 = arith.constant 0 : index
    %8 = vector.load %arg3[%c2, %c0_10] : memref<24x128xf32, #tpu.memory_space<vmem>>, vector<1x96xf32>
    %c3 = arith.constant 3 : index
    %c0_11 = arith.constant 0 : index
    %9 = vector.load %arg3[%c3, %c0_11] : memref<24x128xf32, #tpu.memory_space<vmem>>, vector<1x32xf32>
    %c4 = arith.constant 4 : index
    %c0_12 = arith.constant 0 : index
    %10 = vector.load %arg3[%c4, %c0_12] : memref<24x128xf32, #tpu.memory_space<vmem>>, vector<1x32xf32>
    %c5 = arith.constant 5 : index
    %c0_13 = arith.constant 0 : index
    %11 = vector.load %arg3[%c5, %c0_13] : memref<24x128xf32, #tpu.memory_space<vmem>>, vector<1x32xf32>
    %c6 = arith.constant 6 : index
    %c0_14 = arith.constant 0 : index
    %12 = vector.load %arg3[%c6, %c0_14] : memref<24x128xf32, #tpu.memory_space<vmem>>, vector<1x64xf32>
    %c7 = arith.constant 7 : index
    %c0_15 = arith.constant 0 : index
    %13 = vector.load %arg3[%c7, %c0_15] : memref<24x128xf32, #tpu.memory_space<vmem>>, vector<1x32xf32>
    %cst_16 = arith.constant dense<0.000000e+00> : vector<10xf32>
    %14 = vector.multi_reduction <add>, %5, %cst_16 [1] : vector<10x32xf32> to vector<10xf32>
    %15 = vector.shape_cast %14 : vector<10xf32> to vector<10x1xf32>
    %cst_17 = arith.constant 3.200000e+01 : f32
    %16 = vector.broadcast %cst_17 : f32 to vector<10x1xf32>
    %17 = arith.divf %15, %16 : vector<10x1xf32>
    %18 = vector.broadcast %17 : vector<10x1xf32> to vector<10x32xf32>
    %19 = arith.subf %5, %18 : vector<10x32xf32>
    %20 = arith.mulf %19, %19 : vector<10x32xf32>
    %cst_18 = arith.constant dense<0.000000e+00> : vector<10xf32>
    %21 = vector.multi_reduction <add>, %20, %cst_18 [1] : vector<10x32xf32> to vector<10xf32>
    %22 = vector.shape_cast %21 : vector<10xf32> to vector<10x1xf32>
    %cst_19 = arith.constant 3.200000e+01 : f32
    %23 = vector.broadcast %cst_19 : f32 to vector<10x1xf32>
    %24 = arith.divf %22, %23 : vector<10x1xf32>
    %25 = vector.broadcast %17 : vector<10x1xf32> to vector<10x32xf32>
    %26 = arith.subf %5, %25 : vector<10x32xf32>
    %cst_20 = arith.constant 9.99999974E-6 : f32
    %27 = vector.broadcast %cst_20 : f32 to vector<10x1xf32>
    %28 = arith.addf %24, %27 : vector<10x1xf32>
    %29 = math.rsqrt %28 : vector<10x1xf32>
    %30 = vector.broadcast %29 : vector<10x1xf32> to vector<10x32xf32>
    %31 = arith.mulf %26, %30 : vector<10x32xf32>
    %32 = vector.broadcast %6 : vector<1x32xf32> to vector<10x32xf32>
    %33 = arith.mulf %31, %32 : vector<10x32xf32>
    %34 = vector.broadcast %7 : vector<1x32xf32> to vector<10x32xf32>
    %35 = arith.addf %33, %34 : vector<10x32xf32>
    %c0_21 = arith.constant 0 : index
    %c0_22 = arith.constant 0 : index
    %c0_23 = arith.constant 0 : index
    %36 = vector.load %arg4[%c0_21, %c0_22, %c0_23] : memref<2x32x96xf32, #tpu.memory_space<vmem>>, vector<1x32x96xf32>
    %37 = vector.shape_cast %36 : vector<1x32x96xf32> to vector<32x96xf32>
    %cst_24 = arith.constant dense<0.000000e+00> : vector<10x96xf32>
    %38 = tpu.matmul %35, %37, %cst_24 {dimension_numbers = #tpu.dot_dimension_numbers<[1], [0], [0], [1], [0, 0, 1, 1], [], []>} : vector<10x32xf32>, vector<32x96xf32>, vector<10x96xf32> -> vector<10x96xf32>
    %39 = vector.broadcast %8 : vector<1x96xf32> to vector<10x96xf32>
    %40 = arith.addf %38, %39 : vector<10x96xf32>
    %41 = vector.extract_strided_slice %40 {offsets = [0, 0], sizes = [5, 96], strides = [1, 1]} : vector<10x96xf32> to vector<5x96xf32>
    %42 = vector.extract_strided_slice %41 {offsets = [0, 0], sizes = [5, 8], strides = [1, 1]} : vector<5x96xf32> to vector<5x8xf32>
    %43 = vector.extract_strided_slice %41 {offsets = [0, 8], sizes = [5, 8], strides = [1, 1]} : vector<5x96xf32> to vector<5x8xf32>
    %44 = vector.extract_strided_slice %41 {offsets = [0, 16], sizes = [5, 8], strides = [1, 1]} : vector<5x96xf32> to vector<5x8xf32>
    %45 = vector.extract_strided_slice %41 {offsets = [0, 24], sizes = [5, 8], strides = [1, 1]} : vector<5x96xf32> to vector<5x8xf32>
    %46 = vector.extract_strided_slice %40 {offsets = [5, 0], sizes = [5, 96], strides = [1, 1]} : vector<10x96xf32> to vector<5x96xf32>
    %47 = vector.extract_strided_slice %46 {offsets = [0, 0], sizes = [5, 8], strides = [1, 1]} : vector<5x96xf32> to vector<5x8xf32>
    %48 = vector.extract_strided_slice %46 {offsets = [0, 8], sizes = [5, 8], strides = [1, 1]} : vector<5x96xf32> to vector<5x8xf32>
    %49 = vector.extract_strided_slice %46 {offsets = [0, 16], sizes = [5, 8], strides = [1, 1]} : vector<5x96xf32> to vector<5x8xf32>
    %50 = vector.extract_strided_slice %46 {offsets = [0, 24], sizes = [5, 8], strides = [1, 1]} : vector<5x96xf32> to vector<5x8xf32>
    %51 = tpu.concatenate %42, %43, %44, %45, %47, %48, %49, %50 in 0 : vector<5x8xf32>, vector<5x8xf32>, vector<5x8xf32>, vector<5x8xf32>, vector<5x8xf32>, vector<5x8xf32>, vector<5x8xf32>, vector<5x8xf32> -> vector<40x8xf32>
    %52 = vector.extract_strided_slice %40 {offsets = [0, 0], sizes = [5, 96], strides = [1, 1]} : vector<10x96xf32> to vector<5x96xf32>
    %53 = vector.extract_strided_slice %52 {offsets = [0, 32], sizes = [5, 8], strides = [1, 1]} : vector<5x96xf32> to vector<5x8xf32>
    %54 = vector.extract_strided_slice %52 {offsets = [0, 40], sizes = [5, 8], strides = [1, 1]} : vector<5x96xf32> to vector<5x8xf32>
    %55 = vector.extract_strided_slice %52 {offsets = [0, 48], sizes = [5, 8], strides = [1, 1]} : vector<5x96xf32> to vector<5x8xf32>
    %56 = vector.extract_strided_slice %52 {offsets = [0, 56], sizes = [5, 8], strides = [1, 1]} : vector<5x96xf32> to vector<5x8xf32>
    %57 = vector.extract_strided_slice %40 {offsets = [5, 0], sizes = [5, 96], strides = [1, 1]} : vector<10x96xf32> to vector<5x96xf32>
    %58 = vector.extract_strided_slice %57 {offsets = [0, 32], sizes = [5, 8], strides = [1, 1]} : vector<5x96xf32> to vector<5x8xf32>
    %59 = vector.extract_strided_slice %57 {offsets = [0, 40], sizes = [5, 8], strides = [1, 1]} : vector<5x96xf32> to vector<5x8xf32>
    %60 = vector.extract_strided_slice %57 {offsets = [0, 48], sizes = [5, 8], strides = [1, 1]} : vector<5x96xf32> to vector<5x8xf32>
    %61 = vector.extract_strided_slice %57 {offsets = [0, 56], sizes = [5, 8], strides = [1, 1]} : vector<5x96xf32> to vector<5x8xf32>
    %62 = tpu.concatenate %53, %54, %55, %56, %58, %59, %60, %61 in 0 : vector<5x8xf32>, vector<5x8xf32>, vector<5x8xf32>, vector<5x8xf32>, vector<5x8xf32>, vector<5x8xf32>, vector<5x8xf32>, vector<5x8xf32> -> vector<40x8xf32>
    %63 = vector.extract_strided_slice %40 {offsets = [0, 0], sizes = [5, 96], strides = [1, 1]} : vector<10x96xf32> to vector<5x96xf32>
    %64 = vector.extract_strided_slice %63 {offsets = [0, 64], sizes = [5, 8], strides = [1, 1]} : vector<5x96xf32> to vector<5x8xf32>
    %65 = vector.extract_strided_slice %63 {offsets = [0, 72], sizes = [5, 8], strides = [1, 1]} : vector<5x96xf32> to vector<5x8xf32>
    %66 = vector.extract_strided_slice %63 {offsets = [0, 80], sizes = [5, 8], strides = [1, 1]} : vector<5x96xf32> to vector<5x8xf32>
    %67 = vector.extract_strided_slice %63 {offsets = [0, 88], sizes = [5, 8], strides = [1, 1]} : vector<5x96xf32> to vector<5x8xf32>
    %68 = vector.extract_strided_slice %40 {offsets = [5, 0], sizes = [5, 96], strides = [1, 1]} : vector<10x96xf32> to vector<5x96xf32>
    %69 = vector.extract_strided_slice %68 {offsets = [0, 64], sizes = [5, 8], strides = [1, 1]} : vector<5x96xf32> to vector<5x8xf32>
    %70 = vector.extract_strided_slice %68 {offsets = [0, 72], sizes = [5, 8], strides = [1, 1]} : vector<5x96xf32> to vector<5x8xf32>
    %71 = vector.extract_strided_slice %68 {offsets = [0, 80], sizes = [5, 8], strides = [1, 1]} : vector<5x96xf32> to vector<5x8xf32>
    %72 = vector.extract_strided_slice %68 {offsets = [0, 88], sizes = [5, 8], strides = [1, 1]} : vector<5x96xf32> to vector<5x8xf32>
    %73 = tpu.concatenate %64, %65, %66, %67, %69, %70, %71, %72 in 0 : vector<5x8xf32>, vector<5x8xf32>, vector<5x8xf32>, vector<5x8xf32>, vector<5x8xf32>, vector<5x8xf32>, vector<5x8xf32>, vector<5x8xf32> -> vector<40x8xf32>
    %cst_25 = arith.constant dense<0.000000e+00> : vector<40x40xf32>
    %74 = tpu.matmul %51, %62, %cst_25 {dimension_numbers = #tpu.dot_dimension_numbers<[1], [1], [0], [0], [0, 0, 1, 0], [], []>} : vector<40x8xf32>, vector<40x8xf32>, vector<40x40xf32> -> vector<40x40xf32>
    %cst_26 = arith.constant 0.353553385 : f32
    %75 = vector.broadcast %cst_26 : f32 to vector<40x40xf32>
    %76 = arith.mulf %74, %75 : vector<40x40xf32>
    %77 = arith.addf %76, %0 : vector<40x40xf32>
    %cst_27 = arith.constant dense<0xFF800000> : vector<40xf32>
    %78 = vector.multi_reduction <maximumf>, %77, %cst_27 [1] : vector<40x40xf32> to vector<40xf32>
    %79 = vector.shape_cast %78 : vector<40xf32> to vector<40x1xf32>
    %80 = vector.broadcast %79 : vector<40x1xf32> to vector<40x40xf32>
    %81 = arith.subf %77, %80 : vector<40x40xf32>
    %82 = math.exp %81 : vector<40x40xf32>
    %cst_28 = arith.constant dense<0.000000e+00> : vector<40xf32>
    %83 = vector.multi_reduction <add>, %82, %cst_28 [1] : vector<40x40xf32> to vector<40xf32>
    %84 = vector.shape_cast %83 : vector<40xf32> to vector<40x1xf32>
    %85 = tpu.reciprocal %84 {approx = true} : vector<40x1xf32> -> vector<40x1xf32>
    %86 = vector.broadcast %85 : vector<40x1xf32> to vector<40x40xf32>
    %87 = arith.mulf %82, %86 : vector<40x40xf32>
    %cst_29 = arith.constant dense<0.000000e+00> : vector<40x8xf32>
    %88 = tpu.matmul %87, %73, %cst_29 {dimension_numbers = #tpu.dot_dimension_numbers<[1], [0], [0], [1], [0, 0, 1, 1], [], []>} : vector<40x40xf32>, vector<40x8xf32>, vector<40x8xf32> -> vector<40x8xf32>
    %89 = vector.extract_strided_slice %88 {offsets = [0, 0], sizes = [5, 8], strides = [1, 1]} : vector<40x8xf32> to vector<5x8xf32>
    %90 = vector.extract_strided_slice %88 {offsets = [5, 0], sizes = [5, 8], strides = [1, 1]} : vector<40x8xf32> to vector<5x8xf32>
    %91 = vector.extract_strided_slice %88 {offsets = [10, 0], sizes = [5, 8], strides = [1, 1]} : vector<40x8xf32> to vector<5x8xf32>
    %92 = vector.extract_strided_slice %88 {offsets = [15, 0], sizes = [5, 8], strides = [1, 1]} : vector<40x8xf32> to vector<5x8xf32>
    %93 = tpu.concatenate %89, %90, %91, %92 in 1 : vector<5x8xf32>, vector<5x8xf32>, vector<5x8xf32>, vector<5x8xf32> -> vector<5x32xf32>
    %94 = vector.extract_strided_slice %88 {offsets = [20, 0], sizes = [5, 8], strides = [1, 1]} : vector<40x8xf32> to vector<5x8xf32>
    %95 = vector.extract_strided_slice %88 {offsets = [25, 0], sizes = [5, 8], strides = [1, 1]} : vector<40x8xf32> to vector<5x8xf32>
    %96 = vector.extract_strided_slice %88 {offsets = [30, 0], sizes = [5, 8], strides = [1, 1]} : vector<40x8xf32> to vector<5x8xf32>
    %97 = vector.extract_strided_slice %88 {offsets = [35, 0], sizes = [5, 8], strides = [1, 1]} : vector<40x8xf32> to vector<5x8xf32>
    %98 = tpu.concatenate %94, %95, %96, %97 in 1 : vector<5x8xf32>, vector<5x8xf32>, vector<5x8xf32>, vector<5x8xf32> -> vector<5x32xf32>
    %99 = tpu.concatenate %93, %98 in 0 : vector<5x32xf32>, vector<5x32xf32> -> vector<10x32xf32>
    %c0_30 = arith.constant 0 : index
    %c0_31 = arith.constant 0 : index
    %c0_32 = arith.constant 0 : index
    %100 = vector.load %arg5[%c0_30, %c0_31, %c0_32] : memref<2x32x32xf32, #tpu.memory_space<vmem>>, vector<1x32x32xf32>
    %101 = vector.shape_cast %100 : vector<1x32x32xf32> to vector<32x32xf32>
    %cst_33 = arith.constant dense<0.000000e+00> : vector<10x32xf32>
    %102 = tpu.matmul %99, %101, %cst_33 {dimension_numbers = #tpu.dot_dimension_numbers<[1], [0], [0], [1], [0, 0, 1, 1], [], []>} : vector<10x32xf32>, vector<32x32xf32>, vector<10x32xf32> -> vector<10x32xf32>
    %103 = vector.broadcast %9 : vector<1x32xf32> to vector<10x32xf32>
    %104 = arith.addf %102, %103 : vector<10x32xf32>
    %105 = arith.addf %5, %104 : vector<10x32xf32>
    %cst_34 = arith.constant dense<0.000000e+00> : vector<10xf32>
    %106 = vector.multi_reduction <add>, %105, %cst_34 [1] : vector<10x32xf32> to vector<10xf32>
    %107 = vector.shape_cast %106 : vector<10xf32> to vector<10x1xf32>
    %cst_35 = arith.constant 3.200000e+01 : f32
    %108 = vector.broadcast %cst_35 : f32 to vector<10x1xf32>
    %109 = arith.divf %107, %108 : vector<10x1xf32>
    %110 = vector.broadcast %109 : vector<10x1xf32> to vector<10x32xf32>
    %111 = arith.subf %105, %110 : vector<10x32xf32>
    %112 = arith.mulf %111, %111 : vector<10x32xf32>
    %cst_36 = arith.constant dense<0.000000e+00> : vector<10xf32>
    %113 = vector.multi_reduction <add>, %112, %cst_36 [1] : vector<10x32xf32> to vector<10xf32>
    %114 = vector.shape_cast %113 : vector<10xf32> to vector<10x1xf32>
    %cst_37 = arith.constant 3.200000e+01 : f32
    %115 = vector.broadcast %cst_37 : f32 to vector<10x1xf32>
    %116 = arith.divf %114, %115 : vector<10x1xf32>
    %117 = vector.broadcast %109 : vector<10x1xf32> to vector<10x32xf32>
    %118 = arith.subf %105, %117 : vector<10x32xf32>
    %cst_38 = arith.constant 9.99999974E-6 : f32
    %119 = vector.broadcast %cst_38 : f32 to vector<10x1xf32>
    %120 = arith.addf %116, %119 : vector<10x1xf32>
    %121 = math.rsqrt %120 : vector<10x1xf32>
    %122 = vector.broadcast %121 : vector<10x1xf32> to vector<10x32xf32>
    %123 = arith.mulf %118, %122 : vector<10x32xf32>
    %124 = vector.broadcast %10 : vector<1x32xf32> to vector<10x32xf32>
    %125 = arith.mulf %123, %124 : vector<10x32xf32>
    %126 = vector.broadcast %11 : vector<1x32xf32> to vector<10x32xf32>
    %127 = arith.addf %125, %126 : vector<10x32xf32>
    %c0_39 = arith.constant 0 : index
    %c0_40 = arith.constant 0 : index
    %c0_41 = arith.constant 0 : index
    %128 = vector.load %arg6[%c0_39, %c0_40, %c0_41] : memref<2x32x64xf32, #tpu.memory_space<vmem>>, vector<1x32x64xf32>
    %129 = vector.shape_cast %128 : vector<1x32x64xf32> to vector<32x64xf32>
    %cst_42 = arith.constant dense<0.000000e+00> : vector<10x64xf32>
    %130 = tpu.matmul %127, %129, %cst_42 {dimension_numbers = #tpu.dot_dimension_numbers<[1], [0], [0], [1], [0, 0, 1, 1], [], []>} : vector<10x32xf32>, vector<32x64xf32>, vector<10x64xf32> -> vector<10x64xf32>
    %131 = vector.broadcast %12 : vector<1x64xf32> to vector<10x64xf32>
    %132 = arith.addf %130, %131 : vector<10x64xf32>
    %cst_43 = arith.constant 5.000000e-01 : f32
    %133 = vector.broadcast %cst_43 : f32 to vector<10x64xf32>
    %134 = arith.mulf %133, %132 : vector<10x64xf32>
    %cst_44 = arith.constant 0.707106769 : f32
    %135 = vector.broadcast %cst_44 : f32 to vector<10x64xf32>
    %136 = arith.mulf %132, %135 : vector<10x64xf32>
    %137 = math.erf %136 : vector<10x64xf32>
    %cst_45 = arith.constant 1.000000e+00 : f32
    %138 = vector.broadcast %cst_45 : f32 to vector<10x64xf32>
    %139 = arith.addf %138, %137 : vector<10x64xf32>
    %140 = arith.mulf %134, %139 : vector<10x64xf32>
    %c0_46 = arith.constant 0 : index
    %c0_47 = arith.constant 0 : index
    %c0_48 = arith.constant 0 : index
    %141 = vector.load %arg7[%c0_46, %c0_47, %c0_48] : memref<2x64x32xf32, #tpu.memory_space<vmem>>, vector<1x64x32xf32>
    %142 = vector.shape_cast %141 : vector<1x64x32xf32> to vector<64x32xf32>
    %cst_49 = arith.constant dense<0.000000e+00> : vector<10x32xf32>
    %143 = tpu.matmul %140, %142, %cst_49 {dimension_numbers = #tpu.dot_dimension_numbers<[1], [0], [0], [1], [0, 0, 1, 1], [], []>} : vector<10x64xf32>, vector<64x32xf32>, vector<10x32xf32> -> vector<10x32xf32>
    %144 = vector.broadcast %13 : vector<1x32xf32> to vector<10x32xf32>
    %145 = arith.addf %143, %144 : vector<10x32xf32>
    %146 = arith.addf %105, %145 : vector<10x32xf32>
    %c8 = arith.constant 8 : index
    %c0_50 = arith.constant 0 : index
    %147 = vector.load %arg3[%c8, %c0_50] : memref<24x128xf32, #tpu.memory_space<vmem>>, vector<1x32xf32>
    %c9 = arith.constant 9 : index
    %c0_51 = arith.constant 0 : index
    %148 = vector.load %arg3[%c9, %c0_51] : memref<24x128xf32, #tpu.memory_space<vmem>>, vector<1x32xf32>
    %c10 = arith.constant 10 : index
    %c0_52 = arith.constant 0 : index
    %149 = vector.load %arg3[%c10, %c0_52] : memref<24x128xf32, #tpu.memory_space<vmem>>, vector<1x96xf32>
    %c11 = arith.constant 11 : index
    %c0_53 = arith.constant 0 : index
    %150 = vector.load %arg3[%c11, %c0_53] : memref<24x128xf32, #tpu.memory_space<vmem>>, vector<1x32xf32>
    %c12 = arith.constant 12 : index
    %c0_54 = arith.constant 0 : index
    %151 = vector.load %arg3[%c12, %c0_54] : memref<24x128xf32, #tpu.memory_space<vmem>>, vector<1x32xf32>
    %c13 = arith.constant 13 : index
    %c0_55 = arith.constant 0 : index
    %152 = vector.load %arg3[%c13, %c0_55] : memref<24x128xf32, #tpu.memory_space<vmem>>, vector<1x32xf32>
    %c14 = arith.constant 14 : index
    %c0_56 = arith.constant 0 : index
    %153 = vector.load %arg3[%c14, %c0_56] : memref<24x128xf32, #tpu.memory_space<vmem>>, vector<1x64xf32>
    %c15 = arith.constant 15 : index
    %c0_57 = arith.constant 0 : index
    %154 = vector.load %arg3[%c15, %c0_57] : memref<24x128xf32, #tpu.memory_space<vmem>>, vector<1x32xf32>
    %cst_58 = arith.constant dense<0.000000e+00> : vector<10xf32>
    %155 = vector.multi_reduction <add>, %146, %cst_58 [1] : vector<10x32xf32> to vector<10xf32>
    %156 = vector.shape_cast %155 : vector<10xf32> to vector<10x1xf32>
    %cst_59 = arith.constant 3.200000e+01 : f32
    %157 = vector.broadcast %cst_59 : f32 to vector<10x1xf32>
    %158 = arith.divf %156, %157 : vector<10x1xf32>
    %159 = vector.broadcast %158 : vector<10x1xf32> to vector<10x32xf32>
    %160 = arith.subf %146, %159 : vector<10x32xf32>
    %161 = arith.mulf %160, %160 : vector<10x32xf32>
    %cst_60 = arith.constant dense<0.000000e+00> : vector<10xf32>
    %162 = vector.multi_reduction <add>, %161, %cst_60 [1] : vector<10x32xf32> to vector<10xf32>
    %163 = vector.shape_cast %162 : vector<10xf32> to vector<10x1xf32>
    %cst_61 = arith.constant 3.200000e+01 : f32
    %164 = vector.broadcast %cst_61 : f32 to vector<10x1xf32>
    %165 = arith.divf %163, %164 : vector<10x1xf32>
    %166 = vector.broadcast %158 : vector<10x1xf32> to vector<10x32xf32>
    %167 = arith.subf %146, %166 : vector<10x32xf32>
    %cst_62 = arith.constant 9.99999974E-6 : f32
    %168 = vector.broadcast %cst_62 : f32 to vector<10x1xf32>
    %169 = arith.addf %165, %168 : vector<10x1xf32>
    %170 = math.rsqrt %169 : vector<10x1xf32>
    %171 = vector.broadcast %170 : vector<10x1xf32> to vector<10x32xf32>
    %172 = arith.mulf %167, %171 : vector<10x32xf32>
    %173 = vector.broadcast %147 : vector<1x32xf32> to vector<10x32xf32>
    %174 = arith.mulf %172, %173 : vector<10x32xf32>
    %175 = vector.broadcast %148 : vector<1x32xf32> to vector<10x32xf32>
    %176 = arith.addf %174, %175 : vector<10x32xf32>
    %c1_63 = arith.constant 1 : index
    %c0_64 = arith.constant 0 : index
    %c0_65 = arith.constant 0 : index
    %177 = vector.load %arg4[%c1_63, %c0_64, %c0_65] : memref<2x32x96xf32, #tpu.memory_space<vmem>>, vector<1x32x96xf32>
    %178 = vector.shape_cast %177 : vector<1x32x96xf32> to vector<32x96xf32>
    %cst_66 = arith.constant dense<0.000000e+00> : vector<10x96xf32>
    %179 = tpu.matmul %176, %178, %cst_66 {dimension_numbers = #tpu.dot_dimension_numbers<[1], [0], [0], [1], [0, 0, 1, 1], [], []>} : vector<10x32xf32>, vector<32x96xf32>, vector<10x96xf32> -> vector<10x96xf32>
    %180 = vector.broadcast %149 : vector<1x96xf32> to vector<10x96xf32>
    %181 = arith.addf %179, %180 : vector<10x96xf32>
    %182 = vector.extract_strided_slice %181 {offsets = [0, 0], sizes = [5, 96], strides = [1, 1]} : vector<10x96xf32> to vector<5x96xf32>
    %183 = vector.extract_strided_slice %182 {offsets = [0, 0], sizes = [5, 8], strides = [1, 1]} : vector<5x96xf32> to vector<5x8xf32>
    %184 = vector.extract_strided_slice %182 {offsets = [0, 8], sizes = [5, 8], strides = [1, 1]} : vector<5x96xf32> to vector<5x8xf32>
    %185 = vector.extract_strided_slice %182 {offsets = [0, 16], sizes = [5, 8], strides = [1, 1]} : vector<5x96xf32> to vector<5x8xf32>
    %186 = vector.extract_strided_slice %182 {offsets = [0, 24], sizes = [5, 8], strides = [1, 1]} : vector<5x96xf32> to vector<5x8xf32>
    %187 = vector.extract_strided_slice %181 {offsets = [5, 0], sizes = [5, 96], strides = [1, 1]} : vector<10x96xf32> to vector<5x96xf32>
    %188 = vector.extract_strided_slice %187 {offsets = [0, 0], sizes = [5, 8], strides = [1, 1]} : vector<5x96xf32> to vector<5x8xf32>
    %189 = vector.extract_strided_slice %187 {offsets = [0, 8], sizes = [5, 8], strides = [1, 1]} : vector<5x96xf32> to vector<5x8xf32>
    %190 = vector.extract_strided_slice %187 {offsets = [0, 16], sizes = [5, 8], strides = [1, 1]} : vector<5x96xf32> to vector<5x8xf32>
    %191 = vector.extract_strided_slice %187 {offsets = [0, 24], sizes = [5, 8], strides = [1, 1]} : vector<5x96xf32> to vector<5x8xf32>
    %192 = tpu.concatenate %183, %184, %185, %186, %188, %189, %190, %191 in 0 : vector<5x8xf32>, vector<5x8xf32>, vector<5x8xf32>, vector<5x8xf32>, vector<5x8xf32>, vector<5x8xf32>, vector<5x8xf32>, vector<5x8xf32> -> vector<40x8xf32>
    %193 = vector.extract_strided_slice %181 {offsets = [0, 0], sizes = [5, 96], strides = [1, 1]} : vector<10x96xf32> to vector<5x96xf32>
    %194 = vector.extract_strided_slice %193 {offsets = [0, 32], sizes = [5, 8], strides = [1, 1]} : vector<5x96xf32> to vector<5x8xf32>
    %195 = vector.extract_strided_slice %193 {offsets = [0, 40], sizes = [5, 8], strides = [1, 1]} : vector<5x96xf32> to vector<5x8xf32>
    %196 = vector.extract_strided_slice %193 {offsets = [0, 48], sizes = [5, 8], strides = [1, 1]} : vector<5x96xf32> to vector<5x8xf32>
    %197 = vector.extract_strided_slice %193 {offsets = [0, 56], sizes = [5, 8], strides = [1, 1]} : vector<5x96xf32> to vector<5x8xf32>
    %198 = vector.extract_strided_slice %181 {offsets = [5, 0], sizes = [5, 96], strides = [1, 1]} : vector<10x96xf32> to vector<5x96xf32>
    %199 = vector.extract_strided_slice %198 {offsets = [0, 32], sizes = [5, 8], strides = [1, 1]} : vector<5x96xf32> to vector<5x8xf32>
    %200 = vector.extract_strided_slice %198 {offsets = [0, 40], sizes = [5, 8], strides = [1, 1]} : vector<5x96xf32> to vector<5x8xf32>
    %201 = vector.extract_strided_slice %198 {offsets = [0, 48], sizes = [5, 8], strides = [1, 1]} : vector<5x96xf32> to vector<5x8xf32>
    %202 = vector.extract_strided_slice %198 {offsets = [0, 56], sizes = [5, 8], strides = [1, 1]} : vector<5x96xf32> to vector<5x8xf32>
    %203 = tpu.concatenate %194, %195, %196, %197, %199, %200, %201, %202 in 0 : vector<5x8xf32>, vector<5x8xf32>, vector<5x8xf32>, vector<5x8xf32>, vector<5x8xf32>, vector<5x8xf32>, vector<5x8xf32>, vector<5x8xf32> -> vector<40x8xf32>
    %204 = vector.extract_strided_slice %181 {offsets = [0, 0], sizes = [5, 96], strides = [1, 1]} : vector<10x96xf32> to vector<5x96xf32>
    %205 = vector.extract_strided_slice %204 {offsets = [0, 64], sizes = [5, 8], strides = [1, 1]} : vector<5x96xf32> to vector<5x8xf32>
    %206 = vector.extract_strided_slice %204 {offsets = [0, 72], sizes = [5, 8], strides = [1, 1]} : vector<5x96xf32> to vector<5x8xf32>
    %207 = vector.extract_strided_slice %204 {offsets = [0, 80], sizes = [5, 8], strides = [1, 1]} : vector<5x96xf32> to vector<5x8xf32>
    %208 = vector.extract_strided_slice %204 {offsets = [0, 88], sizes = [5, 8], strides = [1, 1]} : vector<5x96xf32> to vector<5x8xf32>
    %209 = vector.extract_strided_slice %181 {offsets = [5, 0], sizes = [5, 96], strides = [1, 1]} : vector<10x96xf32> to vector<5x96xf32>
    %210 = vector.extract_strided_slice %209 {offsets = [0, 64], sizes = [5, 8], strides = [1, 1]} : vector<5x96xf32> to vector<5x8xf32>
    %211 = vector.extract_strided_slice %209 {offsets = [0, 72], sizes = [5, 8], strides = [1, 1]} : vector<5x96xf32> to vector<5x8xf32>
    %212 = vector.extract_strided_slice %209 {offsets = [0, 80], sizes = [5, 8], strides = [1, 1]} : vector<5x96xf32> to vector<5x8xf32>
    %213 = vector.extract_strided_slice %209 {offsets = [0, 88], sizes = [5, 8], strides = [1, 1]} : vector<5x96xf32> to vector<5x8xf32>
    %214 = tpu.concatenate %205, %206, %207, %208, %210, %211, %212, %213 in 0 : vector<5x8xf32>, vector<5x8xf32>, vector<5x8xf32>, vector<5x8xf32>, vector<5x8xf32>, vector<5x8xf32>, vector<5x8xf32>, vector<5x8xf32> -> vector<40x8xf32>
    %cst_67 = arith.constant dense<0.000000e+00> : vector<40x40xf32>
    %215 = tpu.matmul %192, %203, %cst_67 {dimension_numbers = #tpu.dot_dimension_numbers<[1], [1], [0], [0], [0, 0, 1, 0], [], []>} : vector<40x8xf32>, vector<40x8xf32>, vector<40x40xf32> -> vector<40x40xf32>
    %cst_68 = arith.constant 0.353553385 : f32
    %216 = vector.broadcast %cst_68 : f32 to vector<40x40xf32>
    %217 = arith.mulf %215, %216 : vector<40x40xf32>
    %218 = arith.addf %217, %0 : vector<40x40xf32>
    %cst_69 = arith.constant dense<0xFF800000> : vector<40xf32>
    %219 = vector.multi_reduction <maximumf>, %218, %cst_69 [1] : vector<40x40xf32> to vector<40xf32>
    %220 = vector.shape_cast %219 : vector<40xf32> to vector<40x1xf32>
    %221 = vector.broadcast %220 : vector<40x1xf32> to vector<40x40xf32>
    %222 = arith.subf %218, %221 : vector<40x40xf32>
    %223 = math.exp %222 : vector<40x40xf32>
    %cst_70 = arith.constant dense<0.000000e+00> : vector<40xf32>
    %224 = vector.multi_reduction <add>, %223, %cst_70 [1] : vector<40x40xf32> to vector<40xf32>
    %225 = vector.shape_cast %224 : vector<40xf32> to vector<40x1xf32>
    %226 = tpu.reciprocal %225 {approx = true} : vector<40x1xf32> -> vector<40x1xf32>
    %227 = vector.broadcast %226 : vector<40x1xf32> to vector<40x40xf32>
    %228 = arith.mulf %223, %227 : vector<40x40xf32>
    %cst_71 = arith.constant dense<0.000000e+00> : vector<40x8xf32>
    %229 = tpu.matmul %228, %214, %cst_71 {dimension_numbers = #tpu.dot_dimension_numbers<[1], [0], [0], [1], [0, 0, 1, 1], [], []>} : vector<40x40xf32>, vector<40x8xf32>, vector<40x8xf32> -> vector<40x8xf32>
    %230 = vector.extract_strided_slice %229 {offsets = [0, 0], sizes = [5, 8], strides = [1, 1]} : vector<40x8xf32> to vector<5x8xf32>
    %231 = vector.extract_strided_slice %229 {offsets = [5, 0], sizes = [5, 8], strides = [1, 1]} : vector<40x8xf32> to vector<5x8xf32>
    %232 = vector.extract_strided_slice %229 {offsets = [10, 0], sizes = [5, 8], strides = [1, 1]} : vector<40x8xf32> to vector<5x8xf32>
    %233 = vector.extract_strided_slice %229 {offsets = [15, 0], sizes = [5, 8], strides = [1, 1]} : vector<40x8xf32> to vector<5x8xf32>
    %234 = tpu.concatenate %230, %231, %232, %233 in 1 : vector<5x8xf32>, vector<5x8xf32>, vector<5x8xf32>, vector<5x8xf32> -> vector<5x32xf32>
    %235 = vector.extract_strided_slice %229 {offsets = [20, 0], sizes = [5, 8], strides = [1, 1]} : vector<40x8xf32> to vector<5x8xf32>
    %236 = vector.extract_strided_slice %229 {offsets = [25, 0], sizes = [5, 8], strides = [1, 1]} : vector<40x8xf32> to vector<5x8xf32>
    %237 = vector.extract_strided_slice %229 {offsets = [30, 0], sizes = [5, 8], strides = [1, 1]} : vector<40x8xf32> to vector<5x8xf32>
    %238 = vector.extract_strided_slice %229 {offsets = [35, 0], sizes = [5, 8], strides = [1, 1]} : vector<40x8xf32> to vector<5x8xf32>
    %239 = tpu.concatenate %235, %236, %237, %238 in 1 : vector<5x8xf32>, vector<5x8xf32>, vector<5x8xf32>, vector<5x8xf32> -> vector<5x32xf32>
    %240 = tpu.concatenate %234, %239 in 0 : vector<5x32xf32>, vector<5x32xf32> -> vector<10x32xf32>
    %c1_72 = arith.constant 1 : index
    %c0_73 = arith.constant 0 : index
    %c0_74 = arith.constant 0 : index
    %241 = vector.load %arg5[%c1_72, %c0_73, %c0_74] : memref<2x32x32xf32, #tpu.memory_space<vmem>>, vector<1x32x32xf32>
    %242 = vector.shape_cast %241 : vector<1x32x32xf32> to vector<32x32xf32>
    %cst_75 = arith.constant dense<0.000000e+00> : vector<10x32xf32>
    %243 = tpu.matmul %240, %242, %cst_75 {dimension_numbers = #tpu.dot_dimension_numbers<[1], [0], [0], [1], [0, 0, 1, 1], [], []>} : vector<10x32xf32>, vector<32x32xf32>, vector<10x32xf32> -> vector<10x32xf32>
    %244 = vector.broadcast %150 : vector<1x32xf32> to vector<10x32xf32>
    %245 = arith.addf %243, %244 : vector<10x32xf32>
    %246 = arith.addf %146, %245 : vector<10x32xf32>
    %cst_76 = arith.constant dense<0.000000e+00> : vector<10xf32>
    %247 = vector.multi_reduction <add>, %246, %cst_76 [1] : vector<10x32xf32> to vector<10xf32>
    %248 = vector.shape_cast %247 : vector<10xf32> to vector<10x1xf32>
    %cst_77 = arith.constant 3.200000e+01 : f32
    %249 = vector.broadcast %cst_77 : f32 to vector<10x1xf32>
    %250 = arith.divf %248, %249 : vector<10x1xf32>
    %251 = vector.broadcast %250 : vector<10x1xf32> to vector<10x32xf32>
    %252 = arith.subf %246, %251 : vector<10x32xf32>
    %253 = arith.mulf %252, %252 : vector<10x32xf32>
    %cst_78 = arith.constant dense<0.000000e+00> : vector<10xf32>
    %254 = vector.multi_reduction <add>, %253, %cst_78 [1] : vector<10x32xf32> to vector<10xf32>
    %255 = vector.shape_cast %254 : vector<10xf32> to vector<10x1xf32>
    %cst_79 = arith.constant 3.200000e+01 : f32
    %256 = vector.broadcast %cst_79 : f32 to vector<10x1xf32>
    %257 = arith.divf %255, %256 : vector<10x1xf32>
    %258 = vector.broadcast %250 : vector<10x1xf32> to vector<10x32xf32>
    %259 = arith.subf %246, %258 : vector<10x32xf32>
    %cst_80 = arith.constant 9.99999974E-6 : f32
    %260 = vector.broadcast %cst_80 : f32 to vector<10x1xf32>
    %261 = arith.addf %257, %260 : vector<10x1xf32>
    %262 = math.rsqrt %261 : vector<10x1xf32>
    %263 = vector.broadcast %262 : vector<10x1xf32> to vector<10x32xf32>
    %264 = arith.mulf %259, %263 : vector<10x32xf32>
    %265 = vector.broadcast %151 : vector<1x32xf32> to vector<10x32xf32>
    %266 = arith.mulf %264, %265 : vector<10x32xf32>
    %267 = vector.broadcast %152 : vector<1x32xf32> to vector<10x32xf32>
    %268 = arith.addf %266, %267 : vector<10x32xf32>
    %c1_81 = arith.constant 1 : index
    %c0_82 = arith.constant 0 : index
    %c0_83 = arith.constant 0 : index
    %269 = vector.load %arg6[%c1_81, %c0_82, %c0_83] : memref<2x32x64xf32, #tpu.memory_space<vmem>>, vector<1x32x64xf32>
    %270 = vector.shape_cast %269 : vector<1x32x64xf32> to vector<32x64xf32>
    %cst_84 = arith.constant dense<0.000000e+00> : vector<10x64xf32>
    %271 = tpu.matmul %268, %270, %cst_84 {dimension_numbers = #tpu.dot_dimension_numbers<[1], [0], [0], [1], [0, 0, 1, 1], [], []>} : vector<10x32xf32>, vector<32x64xf32>, vector<10x64xf32> -> vector<10x64xf32>
    %272 = vector.broadcast %153 : vector<1x64xf32> to vector<10x64xf32>
    %273 = arith.addf %271, %272 : vector<10x64xf32>
    %cst_85 = arith.constant 5.000000e-01 : f32
    %274 = vector.broadcast %cst_85 : f32 to vector<10x64xf32>
    %275 = arith.mulf %274, %273 : vector<10x64xf32>
    %cst_86 = arith.constant 0.707106769 : f32
    %276 = vector.broadcast %cst_86 : f32 to vector<10x64xf32>
    %277 = arith.mulf %273, %276 : vector<10x64xf32>
    %278 = math.erf %277 : vector<10x64xf32>
    %cst_87 = arith.constant 1.000000e+00 : f32
    %279 = vector.broadcast %cst_87 : f32 to vector<10x64xf32>
    %280 = arith.addf %279, %278 : vector<10x64xf32>
    %281 = arith.mulf %275, %280 : vector<10x64xf32>
    %c1_88 = arith.constant 1 : index
    %c0_89 = arith.constant 0 : index
    %c0_90 = arith.constant 0 : index
    %282 = vector.load %arg7[%c1_88, %c0_89, %c0_90] : memref<2x64x32xf32, #tpu.memory_space<vmem>>, vector<1x64x32xf32>
    %283 = vector.shape_cast %282 : vector<1x64x32xf32> to vector<64x32xf32>
    %cst_91 = arith.constant dense<0.000000e+00> : vector<10x32xf32>
    %284 = tpu.matmul %281, %283, %cst_91 {dimension_numbers = #tpu.dot_dimension_numbers<[1], [0], [0], [1], [0, 0, 1, 1], [], []>} : vector<10x64xf32>, vector<64x32xf32>, vector<10x32xf32> -> vector<10x32xf32>
    %285 = vector.broadcast %154 : vector<1x32xf32> to vector<10x32xf32>
    %286 = arith.addf %284, %285 : vector<10x32xf32>
    %287 = arith.addf %246, %286 : vector<10x32xf32>
    %288 = vector.extract_strided_slice %287 {offsets = [0, 0], sizes = [1, 32], strides = [1, 1]} : vector<10x32xf32> to vector<1x32xf32>
    %289 = vector.extract_strided_slice %287 {offsets = [5, 0], sizes = [1, 32], strides = [1, 1]} : vector<10x32xf32> to vector<1x32xf32>
    %290 = tpu.concatenate %288, %289 in 0 : vector<1x32xf32>, vector<1x32xf32> -> vector<2x32xf32>
    %c16 = arith.constant 16 : index
    %c0_92 = arith.constant 0 : index
    %291 = vector.load %arg3[%c16, %c0_92] : memref<24x128xf32, #tpu.memory_space<vmem>>, vector<1x32xf32>
    %c17 = arith.constant 17 : index
    %c0_93 = arith.constant 0 : index
    %292 = vector.load %arg3[%c17, %c0_93] : memref<24x128xf32, #tpu.memory_space<vmem>>, vector<1x32xf32>
    %cst_94 = arith.constant dense<0.000000e+00> : vector<2xf32>
    %293 = vector.multi_reduction <add>, %290, %cst_94 [1] : vector<2x32xf32> to vector<2xf32>
    %294 = vector.shape_cast %293 : vector<2xf32> to vector<2x1xf32>
    %cst_95 = arith.constant 3.200000e+01 : f32
    %295 = vector.broadcast %cst_95 : f32 to vector<2x1xf32>
    %296 = arith.divf %294, %295 : vector<2x1xf32>
    %297 = vector.broadcast %296 : vector<2x1xf32> to vector<2x32xf32>
    %298 = arith.subf %290, %297 : vector<2x32xf32>
    %299 = arith.mulf %298, %298 : vector<2x32xf32>
    %cst_96 = arith.constant dense<0.000000e+00> : vector<2xf32>
    %300 = vector.multi_reduction <add>, %299, %cst_96 [1] : vector<2x32xf32> to vector<2xf32>
    %301 = vector.shape_cast %300 : vector<2xf32> to vector<2x1xf32>
    %cst_97 = arith.constant 3.200000e+01 : f32
    %302 = vector.broadcast %cst_97 : f32 to vector<2x1xf32>
    %303 = arith.divf %301, %302 : vector<2x1xf32>
    %304 = vector.broadcast %296 : vector<2x1xf32> to vector<2x32xf32>
    %305 = arith.subf %290, %304 : vector<2x32xf32>
    %cst_98 = arith.constant 9.99999974E-6 : f32
    %306 = vector.broadcast %cst_98 : f32 to vector<2x1xf32>
    %307 = arith.addf %303, %306 : vector<2x1xf32>
    %308 = math.rsqrt %307 : vector<2x1xf32>
    %309 = vector.broadcast %308 : vector<2x1xf32> to vector<2x32xf32>
    %310 = arith.mulf %305, %309 : vector<2x32xf32>
    %311 = vector.broadcast %291 : vector<1x32xf32> to vector<2x32xf32>
    %312 = arith.mulf %310, %311 : vector<2x32xf32>
    %313 = vector.broadcast %292 : vector<1x32xf32> to vector<2x32xf32>
    %314 = arith.addf %312, %313 : vector<2x32xf32>
    %c0_99 = arith.constant 0 : index
    %c0_100 = arith.constant 0 : index
    %315 = vector.load %arg8[%c0_99, %c0_100] : memref<32x10xf32, #tpu.memory_space<vmem>>, vector<32x10xf32>
    %cst_101 = arith.constant dense<0.000000e+00> : vector<2x10xf32>
    %316 = tpu.matmul %314, %315, %cst_101 {dimension_numbers = #tpu.dot_dimension_numbers<[1], [0], [0], [1], [0, 0, 1, 1], [], []>} : vector<2x32xf32>, vector<32x10xf32>, vector<2x10xf32> -> vector<2x10xf32>
    %c18 = arith.constant 18 : index
    %c0_102 = arith.constant 0 : index
    %317 = vector.load %arg3[%c18, %c0_102] : memref<24x128xf32, #tpu.memory_space<vmem>>, vector<1x10xf32>
    %318 = vector.broadcast %317 : vector<1x10xf32> to vector<2x10xf32>
    %319 = arith.addf %316, %318 : vector<2x10xf32>
    %c0_103 = arith.constant 0 : index
    %c0_104 = arith.constant 0 : index
    %320 = vector.load %arg10[%c0_103, %c0_104] : memref<2x10xf32, #tpu.memory_space<vmem>>, vector<2x10xf32>
    tpu.vector_store %arg10[%c0_103, %c0_104], %319 {strides = array<i32>} : memref<2x10xf32, #tpu.memory_space<vmem>>, vector<2x10xf32>,
    return
  }
}

</mosaic_0001>

<bundles_post_ra>
// kernel: adaptation_forward.1
= control target key start
LH: loop header
LB: loop body
LE: loop exit
PB: predicated region body
PF: predicated region fallthrough
CT: control target
= control target key end

     0   :  { %s2404_s0 = inlined_call_operand.vmem [shape: f32[10,256], index: 0, kind: input, shape index: {}]   ;;  %s2405_s1 = inlined_call_operand.vmem [shape: f32[256,32], index: 1, kind: input, shape index: {}]   ;;  %s2406_s2 = inlined_call_operand.vmem [shape: f32[10,32], index: 2, kind: input, shape index: {}]   ;;  %s2407_s3 = inlined_call_operand.vmem [shape: f32[24,128], index: 3, kind: input, shape index: {}]   ;;  %s2408_s4 = inlined_call_operand.vmem [shape: f32[2,32,96], index: 4, kind: input, shape index: {}]   ;;  %s2409_s5 = inlined_call_operand.vmem [shape: f32[2,32,32], index: 5, kind: input, shape index: {}]   ;;  %s2410_s6 = inlined_call_operand.vmem [shape: f32[2,32,64], index: 6, kind: input, shape index: {}]   ;;  %s2411_s7 = inlined_call_operand.vmem [shape: f32[2,64,32], index: 7, kind: input, shape index: {}]   ;;  %s2412_s8 = inlined_call_operand.vmem [shape: f32[32,10], index: 8, kind: input, shape index: {}]   ;;  %s2413_s9 = inlined_call_operand.vmem [shape: f32[40,40], index: 9, kind: input, shape index: {}]   ;;  %s2414_s10 = inlined_call_operand.hbm [shape: f32[2,10], index: 10, kind: output, shape index: {}]  }
   0x1   :  { %v60_v0 = vld [vmem:[%s2405_s1 + $0x78] sm:$0xff]  ;;  %v59_v1 = vld [vmem:[%s2405_s1 + $0x70] sm:$0xff]  ;;  %v58_v4 = vld [vmem:[%s2405_s1 + $0x68] sm:$0xff] }
   0x2   :  { %v76_v2 = vld [vmem:[%s2405_s1 + $0xf8] sm:$0xff]  ;;  %79 = vmatpush.msra.mxu0 %v60_v0  ;;  %v75_v3 = vld [vmem:[%s2405_s1 + $0xf0] sm:$0xff]  ;;  %v74_v5 = vld [vmem:[%s2405_s1 + $0xe8] sm:$0xff] }
   0x3   :  { %102 = vmatpush.msra.mxu1 %v76_v2  ;;  %v57_v6 = vld [vmem:[%s2405_s1 + $0x60] sm:$0xff]  ;;  %v56_v8 = vld [vmem:[%s2405_s1 + $0x58] sm:$0xff]  ;;  %v55_v10 = vld [vmem:[%s2405_s1 + $0x50] sm:$0xff] }
   0x4   :  { %80 = vmatpush.msra.mxu0 %v59_v1  ;;  %v73_v7 = vld [vmem:[%s2405_s1 + $0xe0] sm:$0xff]  ;;  %v72_v9 = vld [vmem:[%s2405_s1 + $0xd8] sm:$0xff]  ;;  %v71_v11 = vld [vmem:[%s2405_s1 + $0xd0] sm:$0xff] }
   0x5   :  { %103 = vmatpush.msra.mxu1 %v75_v3  ;;  %v54_v12 = vld [vmem:[%s2405_s1 + $0x48] sm:$0xff]  ;;  %v53_v14 = vld [vmem:[%s2405_s1 + $0x40] sm:$0xff]  ;;  %v52_v16 = vld [vmem:[%s2405_s1 + $0x38] sm:$0xff] }
   0x6   :  { %81 = vmatpush.msra.mxu0 %v58_v4  ;;  %v70_v13 = vld [vmem:[%s2405_s1 + $0xc8] sm:$0xff]  ;;  %v69_v15 = vld [vmem:[%s2405_s1 + $0xc0] sm:$0xff]  ;;  %v68_v17 = vld [vmem:[%s2405_s1 + $0xb8] sm:$0xff] }
   0x7   :  { %104 = vmatpush.msra.mxu1 %v74_v5  ;;  %v51_v18 = vld [vmem:[%s2405_s1 + $0x30] sm:$0xff]  ;;  %v50_v20 = vld [vmem:[%s2405_s1 + $0x28] sm:$0xff] }
   0x8   :  { %82 = vmatpush.msra.mxu0 %v57_v6  ;;  %v67_v19 = vld [vmem:[%s2405_s1 + $0xb0] sm:$0xff]  ;;  %v66_v21 = vld [vmem:[%s2405_s1 + $0xa8] sm:$0xff] }
   0x9   :  { %105 = vmatpush.msra.mxu1 %v73_v7 }
   0xa   :  { %83 = vmatpush.msra.mxu0 %v56_v8 }
   0xb   :  { %106 = vmatpush.msra.mxu1 %v72_v9 }
   0xc   :  { %84 = vmatpush.msra.mxu0 %v55_v10 }
   0xd   :  { %107 = vmatpush.msra.mxu1 %v71_v11 }
   0xe   :  { %85 = vmatpush.msra.mxu0 %v54_v12 }
   0xf   :  { %108 = vmatpush.msra.mxu1 %v70_v13 }
  0x10   :  { %86 = vmatpush.msra.mxu0 %v53_v14 }
  0x11   :  { %109 = vmatpush.msra.mxu1 %v69_v15 }
  0x12   :  { %87 = vmatpush.msra.mxu0 %v52_v16 }
  0x13   :  { %110 = vmatpush.msra.mxu1 %v68_v17 }
  0x14   :  { %15 = vsyncpa [#allocation3], 0  ;;  %88 = vmatpush.msra.mxu0 %v51_v18  ;;  %v49_v22 = vld [vmem:[%s2405_s1 + $0x20] sm:$0xff]  ;;  %v48_v24 = vld [vmem:[%s2405_s1 + $0x18] sm:$0xff]  ;;  %vm133_vm0 = vcmask 261120   ;;  %vm137_vm1 = vcmask 254976  }
  0x15   :  { %111 = vmatpush.msra.mxu1 %v67_v19  ;;  %v65_v23 = vld [vmem:[%s2405_s1 + $0xa0] sm:$0xff]  ;;  %v64_v25 = vld [vmem:[%s2405_s1 + $0x98] sm:$0xff]  ;;  %v47_v26 = vld [vmem:[%s2405_s1 + $0x10] sm:$0xff]  ;;  %v1707_v48 = vmov 32.0   ;;  %s1708_s20 = smov 112   ;;  %vm252_vm9 = vcmask 1040384  }
  0x16   :  { %89 = vmatpush.msra.mxu0 %v50_v20  ;;  %v63_v27 = vld [vmem:[%s2405_s1 + $0x90] sm:$0xff]  ;;  %v46_v28 = vld [vmem:[%s2405_s1 + $0x8] sm:$0xff]  ;;  %v45_v30 = vld [vmem:[%s2405_s1] sm:$0xff]  ;;  %1613 = vrcp.f32 %v1707_v48  ;;  %vm245_vm10 = vcmask 1043456   ;;  %vm240_vm11 = vcmask 1046528   ;;  %s1709_s21 = smov 120  }
  0x17   :  { %112 = vmatpush.msra.mxu1 %v66_v21  ;;  %v62_v29 = vld [vmem:[%s2405_s1 + $0x88] sm:$0xff]  ;;  %v61_v31 = vld [vmem:[%s2405_s1 + $0x80] sm:$0xff]  ;;  %v43_v34 = vld [vmem:[%s2404_s0 + $0x10] sm:$0x3]  ;;  %vm262_vm12 = vcmask 1045504   ;;  %s1710_s22 = smov 104  }
  0x18   :  { %90 = vmatpush.msra.mxu0 %v49_v22  ;;  %v41_v32 = vld [vmem:[%s2404_s0] sm:$0xff]  ;;  %v42_v33 = vld [vmem:[%s2404_s0 + $0x8] sm:$0xff]  ;;  %v44_v35 = vld [vmem:[%s2404_s0 + $0x18] sm:$0x3]  ;;  %vm277_vm13 = vcmask 1042432   ;;  %s1711_s23 = smov 96  }
  0x19   :  { %113 = vmatpush.msra.mxu1 %v65_v23  ;;  %v77_v36 = vld [vmem:[%s2406_s2] sm:$0xff]  ;;  %v78_v42 = vld [vmem:[%s2406_s2 + $0x8] sm:$0x3]  ;;  %v195_v1 = vld [vmem:[%s2408_s4 + $0x18] sm:$0xff]  ;;  %vm271_vm14 = vcmask 1041408   ;;  %vm269_vm15 = vcmask 1044480  }
  0x1a   :  { %91 = vmatpush.msra.mxu0 %v48_v24  ;;  %215 = vmatpush.msra.mxu2 %v195_v1  ;;  %v194_v2 = vld [vmem:[%s2408_s4 + $0x10] sm:$0xff]  ;;  %v193_v3 = vld [vmem:[%s2408_s4 + $0x8] sm:$0xff]  ;;  %v192_v4 = vld [vmem:[%s2408_s4] sm:$0xff]  ;;  %s1712_s11 = smov 64   ;;  %s1714_s12 = smov 8  }
  0x1b   :  { %114 = vmatpush.msra.mxu1 %v64_v25  ;;  %v1594_v19 = vld [vmem:[%s2407_s3] ss:$0 sm:$0xff]  ;;  %v1595_v23 = vld [vmem:[%s2407_s3 + $0x1] ss:$0 sm:$0xff]  ;;  %s1715_s13 = smov 24  }
  0x1c   :  { %92 = vmatpush.msra.mxu0 %v47_v26  ;;  %v1614_v49 = vpop.eup %1613  ;;  %216 = vmatpush.msra.mxu2 %v194_v2 }
  0x1d   :  { %115 = vmatpush.msra.mxu1 %v63_v27  ;;  %v142_v50 = vmul.f32 32.0, %v1614_v49  ;;  %vm146_vm2 = vweird.f32 %v1614_v49 }
  0x1e   :  { %93 = vmatpush.msra.mxu0 %v46_v28  ;;  %217 = vmatpush.msra.mxu2 %v193_v3 }
  0x1f   :  { %116 = vmatpush.msra.mxu1 %v62_v29  ;;  %v143_v51 = vsub.f32 1.0, %v142_v50 }
  0x20   :  { %94 = vmatpush.msra.mxu0 %v45_v30  ;;  %218 = vmatpush.msra.mxu2 %v192_v4 }
  0x21   :  { %117 = vmatpush.msra.mxu1 %v61_v31  ;;  %95 = vmatmul.f32.vlgmr.msra.gmra.mxu0 %v41_v32  ;;  %v144_v52 = vmul.f32 %v1614_v49, %v143_v51 }
  0x22   :  { %118 = vmatmul.f32.vlgmr.msra.gmra.mxu1 %v42_v33  ;;  %v1596_v33 = vld [vmem:[%s2407_s3 + $0x2] ss:$0 sm:$0xff] }
  0x23   :  { %v145_v53 = vadd.f32 %v1614_v49, %v144_v52 }
  0x25   :  { %v1894_v54 = vsel %vm146_vm2, %v1614_v49, %v145_v53  ;;  %vm294_vm2 = vcmask 64512  }
  0x29   :  { %98 = vmatmul.f32.gmra.mxu0 %v43_v34 }
  0x2a   :  { %121 = vmatmul.f32.gmra.mxu1 %v44_v35 }
  0x9e   :  { %v96_v37 = vpop.f32.mrf.mxu0 }
  0x9f   :  { %v119_v38 = vpop.f32.mrf.mxu1  ;;  %v97_v39 = vadd.f32 %v96_v37, %v77_v36 }
  0xa1   :  { %v1883_v40 = vadd.f32 %v119_v38, %v97_v39 }
  0xa3   :  { %v134_v41 = vsel %vm133_vm0, %v1883_v40, 0.0 }
  0xa4   :  { %135 = vadd.xlane.f32.xlu0 %v134_v41 }
  0xa6   :  { %v99_v43 = vpop.f32.mrf.mxu0 }
  0xa7   :  { %v122_v44 = vpop.f32.mrf.mxu1  ;;  %v100_v45 = vadd.f32 %v99_v43, %v78_v42 }
  0xa9   :  { %v1890_v46 = vadd.f32 %v122_v44, %v100_v45 }
  0xab   :  { %v138_v47 = vsel %vm137_vm1, %v1890_v46, 0.0 }
  0xac   :  { %139 = vadd.xlane.f32.xlu0 %v138_v47 }
 0x117   :  { %v136_v55 = vpop.xlane.xlu0 %135 }
 0x118   :  { %v148_v56 = vmul.f32 %v1894_v54, %v136_v55 }
 0x11a   :  { %v150_v57 = vsub.f32 %v1883_v40, %v148_v56 }
 0x11c   :  { %v152_v58 = vmul.f32 %v150_v57, %v150_v57 }
 0x11e   :  { %v154_v59 = vsel %vm133_vm0, %v152_v58, 0.0 }
 0x11f   :  { %155 = vadd.xlane.f32.xlu1 %v154_v59  ;;  %v140_v60 = vpop.xlane.xlu0 %139 }
 0x120   :  { %v149_v61 = vmul.f32 %v1894_v54, %v140_v60 }
 0x122   :  { %v151_v62 = vsub.f32 %v1890_v46, %v149_v61 }
 0x124   :  { %v153_v63 = vmul.f32 %v151_v62, %v151_v62 }
 0x126   :  { %v157_v0 = vsel %vm137_vm1, %v153_v63, 0.0 }
 0x127   :  { %158 = vadd.xlane.f32.xlu1 %v157_v0 }
 0x192   :  { %v156_v5 = vpop.xlane.xlu1 %155 }
 0x193   :  { %v160_v6 = vmul.f32 %v156_v5, %v1894_v54 }
 0x195   :  { %v162_v7 = vadd.f32 1e-05, %v160_v6 }
 0x197   :  { %1615 = vrsqrt.f32 %v162_v7  ;;  %vm170_vm4 = vweird.f32 %v162_v7 }
 0x19a   :  { %v159_v8 = vpop.xlane.xlu1 %158 }
 0x19b   :  { %v161_v9 = vmul.f32 %v159_v8, %v1894_v54 }
 0x19d   :  { %v1616_v10 = vpop.eup %1615  ;;  %v163_v11 = vadd.f32 1e-05, %v161_v9 }
 0x19e   :  { %v165_v12 = vmul.f32 %v1616_v10, %v162_v7  ;;  %vm171_vm3 = vweird.f32 %v1616_v10 }
 0x19f   :  { %1617 = vrsqrt.f32 %v163_v11  ;;  %vm172_vm5 = vmor %vm170_vm4, %vm171_vm3  ;;  %vm180_vm7 = vweird.f32 %v163_v11  ;;  %vm2417_vm3 = vcmask 326656   ;;  %vm2416_vm4 = vcmask 130048  }
 0x1a0   :  { %v166_v13 = vmul.f32 %v1616_v10, %v165_v12 }
 0x1a2   :  { %v167_v14 = vmul.f32 0.5, %v166_v13 }
 0x1a4   :  { %v168_v15 = vsub.f32 1.5, %v167_v14 }
 0x1a5   :  { %v1618_v16 = vpop.eup %1617 }
 0x1a6   :  { %v169_v17 = vmul.f32 %v1616_v10, %v168_v15  ;;  %v175_v18 = vmul.f32 %v1618_v16, %v163_v11  ;;  %vm181_vm6 = vweird.f32 %v1618_v16  ;;  %v1975_v11 = vld [vmem:[%s2413_s9] sm:$0xff] }
 0x1a7   :  { %vm182_vm8 = vmor %vm180_vm7, %vm181_vm6 }
 0x1a8   :  { %v173_v20 = vsel %vm172_vm5, %v1616_v10, %v169_v17  ;;  %v176_v21 = vmul.f32 %v1618_v16, %v175_v18  ;;  %vm2415_vm5 = vcmask 195584  }
 0x1a9   :  { %v184_v22 = vmul.f32 %v173_v20, %v150_v57 }
 0x1aa   :  { %v177_v24 = vmul.f32 0.5, %v176_v21  ;;  %v1989_v21 = vld [vmem:[%s2413_s9 + $0x10] sm:$0xff] }
 0x1ab   :  { %v187_v25 = vmul.f32 %v1594_v19, %v184_v22 }
 0x1ac   :  { %v178_v26 = vsub.f32 1.5, %v177_v24 }
 0x1ad   :  { %v190_v27 = vadd.f32 %v1595_v23, %v187_v25 }
 0x1ae   :  { %v179_v28 = vmul.f32 %v1618_v16, %v178_v26  ;;  %v1996_v26 = vld [vmem:[%s2413_s9 + $0x18] sm:$0xff] }
 0x1af   :  { %1493 = vmatmul.msk.f32.vlgmr.msra.gmra.mxu2 %vm133_vm0, %v190_v27 }
 0x1b0   :  { %v183_v29 = vsel %vm182_vm8, %v1618_v16, %v179_v28  ;;  %v1982_v16 = vld [vmem:[%s2413_s9 + $0x8] sm:$0xff] }
 0x1b1   :  { %v185_v30 = vmul.f32 %v183_v29, %v151_v62 }
 0x1b3   :  { %v188_v31 = vmul.f32 %v1594_v19, %v185_v30 }
 0x1b5   :  { %v191_v32 = vadd.f32 %v1595_v23, %v188_v31  ;;  %v2003_v31 = vld [vmem:[%s2413_s9 + $0x20] sm:$0xff]  ;;  %s1713_s9 = smov 16  }
 0x1b7   :  { %1494 = vmatmul.msk.f32.gmra.mxu2 %vm133_vm0, %v191_v32 }
 0x232   :  { %v220_v34 = vpop.f32.mrf.mxu2 }
 0x233   :  { %v221_v35 = vadd.f32 %v1596_v33, %v220_v34 }
 0x235   :  { %v253_v36 = vrot.slane %v221_v35, 7  ;;  %v246_v39 = vrot.slane %v221_v35, 4  ;;  %v235_v43 = vrot.slane %v221_v35, 1  ;;  %v263_v50 = vrot.slane %v221_v35, 2 }
 0x236   :  { %v227_v52 = vrot.slane %v221_v35, 3  ;;  %v231_v53 = vrot.slane %v221_v35, 6 }
 0x237   :  { %256 = vrot.lane.b32.xlu1 %v253_v36, %s1708_s20 }
 0x23a   :  { %v223_v37 = vpop.f32.mrf.mxu2 }
 0x23b   :  { %v224_v38 = vadd.f32 %v1596_v33, %v223_v37 }
 0x23d   :  { %v254_v41 = vrot.slane %v224_v38, 7  ;;  %v247_v42 = vrot.slane %v224_v38, 4  ;;  %v241_v44 = vrot.slane %v224_v38, 1  ;;  %v264_v49 = vrot.slane %v224_v38, 2 }
 0x23f   :  { %v255_v45 = vsel %vm252_vm9, %v253_v36, %v254_v41  ;;  %v248_v47 = vsel %vm245_vm10, %v246_v39, %v247_v42  ;;  %v242_v48 = vsel %vm240_vm11, %v235_v43, %v241_v44  ;;  %v265_v51 = vsel %vm262_vm12, %v263_v50, %v264_v49 }
 0x240   :  { %258 = vrot.lane.b32.xlu2 %v255_v45, %s1708_s20  ;;  %249 = vrot.lane.b32.xlu0 %v248_v47, %s1709_s21 }
 0x248   :  { %266 = vrot.lane.b32.xlu2 %v265_v51, %s1710_s22 }
 0x250   :  { %236 = vrot.lane.b32.xlu2 %v235_v43, %s1710_s22 }
 0x258   :  { %228 = vrot.lane.b32.xlu2 %v227_v52, %s1709_s21 }
 0x260   :  { %232 = vrot.lane.b32.xlu2 %v231_v53, %s1708_s20 }
 0x29a   :  { %v259_v55 = vpop.permute.xlu2 %258 }
 0x2a2   :  { %v267_v56 = vpop.permute.xlu2 %266 }
 0x2a3   :  { %v1939_v57 = vsel %vm277_vm13, %v259_v55, %v267_v56 }
 0x2a4   :  { %292 = vrot.lane.b32.xlu0 %v1939_v57, %s1711_s23 }
 0x2a9   :  { %v257_v62 = vpop.permute.xlu1 %256 }
 0x2aa   :  { %v237_v58 = vpop.permute.xlu2 %236 }
 0x2ab   :  { %v1944_v59 = vsel %vm245_vm10, %v237_v58, %v242_v48 }
 0x2ac   :  { %288 = vrot.lane.b32.xlu1 %v1944_v59, %s1711_s23 }
 0x2b2   :  { %v229_v60 = vpop.permute.xlu2 %228  ;;  %v250_v61 = vpop.permute.xlu0 %249 }
 0x2b3   :  { %v275_v63 = vsel %vm252_vm9, %v241_v44, %v250_v61  ;;  %v1954_v4 = vsel %vm269_vm15, %v221_v35, %v229_v60 }
 0x2b4   :  { %v276_v0 = vsel %vm262_vm12, %v275_v63, %v257_v62 }
 0x2b5   :  { %290 = vrot.lane.b32.xlu2 %v276_v0, %s1711_s23  ;;  %v1574_v35 = vpack.i.bf16 %v276_v0, %v1939_v57 }
 0x2ba   :  { %v233_v1 = vpop.permute.xlu2 %232 }
 0x2bb   :  { %v272_v2 = vsel %vm271_vm14, %v229_v60, %v233_v1 }
 0x2bc   :  { %v273_v3 = vsel %vm240_vm11, %v272_v2, %v237_v58 }
 0x2bd   :  { %286 = vrot.lane.b32.xlu0 %v273_v3, %s1711_s23  ;;  %284 = vrot.lane.b32.xlu2 %v1954_v4, %s1711_s23  ;;  %v1579_v36 = vpack.i.bf16 %v273_v3, %v1944_v59 }
 0x30f   :  { %v291_v6 = vpop.permute.xlu2 %290 }
 0x316   :  { %v293_v5 = vpop.permute.xlu0 %292 }
 0x317   :  { %1495 = vmatpush.xpose.msk.msra.mxu3 %vm294_vm2, %v293_v5  ;;  %v285_v9 = vpop.permute.xlu2 %284 }
 0x31b   :  { %1496 = vmatpush.xpose.msk.msra.mxu3 %vm294_vm2, %v291_v6 }
 0x31e   :  { %v289_v7 = vpop.permute.xlu1 %288 }
 0x31f   :  { %1497 = vmatpush.xpose.msk.msra.mxu3 %vm294_vm2, %v289_v7 }
 0x32f   :  { %v287_v8 = vpop.permute.xlu0 %286 }
 0x330   :  { %1498 = vmatpush.xpose.msk.msra.mxu3 %vm294_vm2, %v287_v8 }
 0x334   :  { %1499 = vmatpush.xpose.msk.msra.mxu3 %vm294_vm2, %v285_v9 }
 0x337   :  { %1500 = vmatmul.msk.f32.vlgmr.msra.gmra.mxu3 %vm294_vm2, %v1954_v4 }
 0x33f   :  { %1501 = vmatmul.msk.f32.gmra.mxu3 %vm294_vm2, %v273_v3 }
 0x347   :  { %1502 = vmatmul.msk.f32.gmra.mxu3 %vm294_vm2, %v1944_v59 }
 0x34f   :  { %1503 = vmatmul.msk.f32.gmra.mxu3 %vm294_vm2, %v276_v0 }
 0x357   :  { %1504 = vmatmul.msk.f32.gmra.mxu3 %vm294_vm2, %v1939_v57 }
 0x3ba   :  { %v332_v10 = vpop.f32.mrf.mxu3 }
 0x3bb   :  { %v347_v12 = vmul.f32 0.35355338, %v332_v10 }
 0x3bd   :  { %v352_v13 = vadd.f32 %v347_v12, %v1975_v11 }
 0x3bf   :  { %v358_v14 = vsel %vm2417_vm3, %v352_v13, -inf }
 0x3c0   :  { %359 = vmax.xlane.f32.xlu1 %v358_v14 }
 0x3c2   :  { %v335_v15 = vpop.f32.mrf.mxu3 }
 0x3c3   :  { %v348_v17 = vmul.f32 0.35355338, %v335_v15 }
 0x3c5   :  { %v353_v18 = vadd.f32 %v348_v17, %v1982_v16 }
 0x3c7   :  { %v361_v19 = vsel %vm2417_vm3, %v353_v18, -inf }
 0x3c8   :  { %362 = vmax.xlane.f32.xlu0 %v361_v19 }
 0x3ca   :  { %v338_v20 = vpop.f32.mrf.mxu3 }
 0x3cb   :  { %v349_v22 = vmul.f32 0.35355338, %v338_v20 }
 0x3cd   :  { %v354_v23 = vadd.f32 %v349_v22, %v1989_v21 }
 0x3cf   :  { %v364_v24 = vsel %vm2417_vm3, %v354_v23, -inf }
 0x3d0   :  { %365 = vmax.xlane.f32.xlu2 %v364_v24 }
 0x3d2   :  { %v341_v25 = vpop.f32.mrf.mxu3 }
 0x3d3   :  { %v350_v27 = vmul.f32 0.35355338, %v341_v25 }
 0x3d5   :  { %v355_v28 = vadd.f32 %v350_v27, %v1996_v26 }
 0x3d7   :  { %v367_v29 = vsel %vm2417_vm3, %v355_v28, -inf }
 0x3d8   :  { %368 = vmax.xlane.f32.xlu1 %v367_v29 }
 0x3da   :  { %v344_v30 = vpop.f32.mrf.mxu3 }
 0x3db   :  { %v351_v32 = vmul.f32 0.35355338, %v344_v30 }
 0x3dd   :  { %v356_v33 = vadd.f32 %v351_v32, %v2003_v31 }
 0x3df   :  { %v370_v34 = vsel %vm2417_vm3, %v356_v33, -inf }
 0x3e0   :  { %371 = vmax.xlane.f32.xlu0 %v370_v34 }
 0x3f1   :  { %1575 = vrot.lane.b32.xlu1 %v1574_v35, %s1712_s11 }
 0x3f4   :  { %1580 = vrot.lane.b32.xlu0 %v1579_v36, %s1712_s11 }
 0x433   :  { %v360_v37 = vpop.xlane.xlu1 %359 }
 0x434   :  { %v373_v38 = vsub.f32 %v352_v13, %v360_v37 }
 0x436   :  { %v378_v39 = vmul.f32 1.442695, %v373_v38 }
 0x438   :  { %1619 = vpow2.f32 %v378_v39 }
 0x43b   :  { %v363_v41 = vpop.xlane.xlu0 %362 }
 0x43c   :  { %v374_v42 = vsub.f32 %v353_v18, %v363_v41 }
 0x43e   :  { %v1620_v43 = vpop.eup %1619  ;;  %v380_v44 = vmul.f32 1.442695, %v374_v42 }
 0x43f   :  { %v388_v45 = vsel %vm2417_vm3, %v1620_v43, 0.0 }
 0x440   :  { %1621 = vpow2.f32 %v380_v44  ;;  %389 = vadd.xlane.f32.xlu2 %v388_v45 }
 0x443   :  { %v366_v47 = vpop.xlane.xlu2 %365 }
 0x444   :  { %v375_v48 = vsub.f32 %v354_v23, %v366_v47  ;;  %v534_v47 = vld [vmem:[%s2409_s5 + $0x18] sm:$0xff] }
 0x445   :  { %553 = vmatpush.msrb.mxu0 %v534_v47 }
 0x446   :  { %v1622_v49 = vpop.eup %1621  ;;  %v382_v50 = vmul.f32 1.442695, %v375_v48  ;;  %v533_v48 = vld [vmem:[%s2409_s5 + $0x10] sm:$0xff] }
 0x447   :  { %v391_v51 = vsel %vm2417_vm3, %v1622_v49, 0.0  ;;  %554 = vmatpush.msrb.mxu0 %v533_v48 }
 0x448   :  { %1623 = vpow2.f32 %v382_v50  ;;  %392 = vadd.xlane.f32.xlu2 %v391_v51  ;;  %v531_v50 = vld [vmem:[%s2409_s5] sm:$0xff] }
 0x44b   :  { %v369_v52 = vpop.xlane.xlu1 %368 }
 0x44c   :  { %v376_v53 = vsub.f32 %v355_v28, %v369_v52 }
 0x44e   :  { %v1624_v55 = vpop.eup %1623  ;;  %v384_v56 = vmul.f32 1.442695, %v376_v53 }
 0x44f   :  { %v394_v57 = vsel %vm2417_vm3, %v1624_v55, 0.0 }
 0x450   :  { %1625 = vpow2.f32 %v384_v56  ;;  %395 = vadd.xlane.f32.xlu0 %v394_v57 }
 0x453   :  { %v372_v60 = vpop.xlane.xlu0 %371 }
 0x454   :  { %v377_v3 = vsub.f32 %v356_v33, %v372_v60 }
 0x456   :  { %v1626_v58 = vpop.eup %1625  ;;  %v386_v5 = vmul.f32 1.442695, %v377_v3 }
 0x457   :  { %v397_v59 = vsel %vm2417_vm3, %v1626_v58, 0.0 }
 0x458   :  { %398 = vadd.xlane.f32.xlu1 %v397_v59  ;;  %1627 = vpow2.f32 %v386_v5 }
 0x45e   :  { %v1628_v6 = vpop.eup %1627 }
 0x45f   :  { %v400_v7 = vsel %vm2417_vm3, %v1628_v6, 0.0 }
 0x460   :  { %413 = vrot.lane.b32.xlu2 %v1954_v4, %s1712_s11 }
 0x463   :  { %v1576_v61 = vpop.permute.xlu1 %1575 }
 0x464   :  { %v1577_v62 = vunpack.i.l.bf16 %v1576_v61  ;;  %v1578_v0 = vunpack.i.h.bf16 %v1576_v61 }
 0x466   :  { %v1581_v63 = vpop.permute.xlu0 %1580  ;;  %454 = vmatpush.msrb.mxu2 %v1577_v62 }
 0x467   :  { %v1582_v1 = vunpack.i.l.bf16 %v1581_v63  ;;  %v1583_v2 = vunpack.i.h.bf16 %v1581_v63 }
 0x468   :  { %455 = vmatpush.msrb.mxu2 %v1578_v0 }
 0x46a   :  { %456 = vmatpush.msrb.mxu2 %v1582_v1 }
 0x46c   :  { %457 = vmatpush.msrb.mxu2 %v1583_v2 }
 0x489   :  { %401 = vadd.xlane.f32.xlu2 %v400_v7 }
 0x4b3   :  { %v390_v8 = vpop.xlane.xlu2 %389 }
 0x4b4   :  { %1629 = vrcp.f32 %v390_v8 }
 0x4ba   :  { %v1630_v9 = vpop.eup %1629 }
 0x4bb   :  { %v393_v4 = vpop.xlane.xlu2 %392  ;;  %v408_v12 = vmul.f32 %v1630_v9, %v1620_v43 }
 0x4bc   :  { %1631 = vrcp.f32 %v393_v4  ;;  %v1597_v4 = vld [vmem:[%s2407_s3 + $0x3] ss:$0 sm:$0xff] }
 0x4c2   :  { %v1632_v14 = vpop.eup %1631 }
 0x4c3   :  { %v414_v10 = vpop.permute.xlu2 %413  ;;  %v396_v13 = vpop.xlane.xlu0 %395  ;;  %v409_v15 = vmul.f32 %v1632_v14, %v1622_v49  ;;  %v532_v49 = vld [vmem:[%s2409_s5 + $0x8] sm:$0xff] }
 0x4c4   :  { %458 = vmatpush.msrb.mxu2 %v414_v10  ;;  %1633 = vrcp.f32 %v396_v13  ;;  %555 = vmatpush.msrb.mxu0 %v532_v49 }
 0x4c5   :  { %1505 = vmatmul.msk.f32.vlgmr.msrb.gmra.mxu2 %vm2417_vm3, %v408_v12 }
 0x4c6   :  { %556 = vmatpush.msrb.mxu0 %v531_v50  ;;  %v1598_v50 = vld [vmem:[%s2407_s3 + $0x4] ss:$0 sm:$0xff] }
 0x4ca   :  { %v1634_v18 = vpop.eup %1633 }
 0x4cb   :  { %v399_v17 = vpop.xlane.xlu1 %398  ;;  %v410_v19 = vmul.f32 %v1634_v18, %v1624_v55 }
 0x4cc   :  { %1635 = vrcp.f32 %v399_v17 }
 0x4cd   :  { %1506 = vmatmul.msk.f32.gmra.mxu2 %vm2417_vm3, %v409_v15 }
 0x4d2   :  { %v1636_v20 = vpop.eup %1635 }
 0x4d3   :  { %v411_v22 = vmul.f32 %v1636_v20, %v1626_v58 }
 0x4d5   :  { %1507 = vmatmul.msk.f32.gmra.mxu2 %vm2417_vm3, %v410_v19 }
 0x4dd   :  { %1508 = vmatmul.msk.f32.gmra.mxu2 %vm2417_vm3, %v411_v22 }
 0x4fc   :  { %v402_v23 = vpop.xlane.xlu2 %401 }
 0x4fd   :  { %1637 = vrcp.f32 %v402_v23 }
 0x503   :  { %v1638_v24 = vpop.eup %1637 }
 0x504   :  { %v412_v25 = vmul.f32 %v1638_v24, %v1628_v6 }
 0x506   :  { %1509 = vmatmul.msk.f32.gmra.mxu2 %vm2417_vm3, %v412_v25 }
 0x548   :  { %v460_v27 = vpop.f32.mrf.mxu2 }
 0x549   :  { %v477_v29 = vrot.slane %v460_v27, 5 }
 0x550   :  { %v463_v28 = vpop.f32.mrf.mxu2 }
 0x551   :  { %v478_v30 = vrot.slane %v463_v28, 5  ;;  %v483_v32 = vrot.slane %v463_v28, 2  ;;  %v488_v44 = vrot.slane %v463_v28, 7 }
 0x553   :  { %484 = vrot.lane.b32.xlu1 %v483_v32, %s1713_s9  ;;  %v479_v33 = vsel %vm277_vm13, %v477_v29, %v478_v30  ;;  %v619_v29 = vld [vmem:[%s2410_s6 + $0x18] sm:$0xff]  ;;  %v618_v30 = vld [vmem:[%s2410_s6 + $0x10] sm:$0xff]  ;;  %v617_v32 = vld [vmem:[%s2410_s6 + $0x8] sm:$0xff] }
 0x554   :  { %480 = vrot.lane.b32.xlu2 %v479_v33, %s1714_s12  ;;  %639 = vmatpush.msrb.mxu1 %v619_v29  ;;  %v616_v33 = vld [vmem:[%s2410_s6] sm:$0xff] }
 0x556   :  { %640 = vmatpush.msrb.mxu1 %v618_v30 }
 0x558   :  { %v466_v34 = vpop.f32.mrf.mxu2  ;;  %641 = vmatpush.msrb.mxu1 %v617_v32 }
 0x559   :  { %v489_v43 = vrot.slane %v466_v34, 7 }
 0x55a   :  { %642 = vmatpush.msrb.mxu1 %v616_v33  ;;  %v740_v33 = vld [vmem:[%s2411_s7 + $0x10] sm:$0xff] }
 0x55b   :  { %v490_v45 = vsel %vm252_vm9, %v488_v44, %v489_v43 }
 0x560   :  { %v469_v35 = vpop.f32.mrf.mxu2 }
 0x561   :  { %v500_v36 = vrot.slane %v469_v35, 5  ;;  %v505_v38 = vrot.slane %v469_v35, 2 }
 0x563   :  { %501 = vrot.lane.b32.xlu0 %v500_v36, %s1714_s12 }
 0x589   :  { %v472_v37 = vpop.f32.mrf.mxu2 }
 0x58a   :  { %v506_v39 = vrot.slane %v472_v37, 2  ;;  %v514_v41 = vrot.slane %v472_v37, 7 }
 0x58c   :  { %515 = vrot.lane.b32.xlu0 %v514_v41, %s1715_s13  ;;  %v507_v42 = vsel %vm262_vm12, %v505_v38, %v506_v39 }
 0x58d   :  { %508 = vrot.lane.b32.xlu1 %v507_v42, %s1713_s9 }
 0x594   :  { %491 = vrot.lane.b32.xlu0 %v490_v45, %s1715_s13 }
 0x595   :  { %510 = vrot.lane.b32.xlu1 %v506_v39, %s1713_s9 }
 0x5ae   :  { %v481_v58 = vpop.permute.xlu2 %480 }
 0x5af   :  { %v494_v60 = vsel %vm294_vm2, %v460_v27, %v481_v58 }
 0x5c5   :  { %v485_v52 = vpop.permute.xlu1 %484 }
 0x5c6   :  { %v496_v61 = vsel %vm2416_vm4, %v494_v60, %v485_v52 }
 0x5d5   :  { %v502_v51 = vpop.permute.xlu0 %501 }
 0x5d6   :  { %v518_v55 = vsel %vm294_vm2, %v466_v34, %v502_v51  ;;  %v519_v0 = vsel %vm294_vm2, %v469_v35, %v502_v51 }
 0x5fe   :  { %v516_v53 = vpop.permute.xlu0 %515 }
 0x5ff   :  { %v509_v56 = vpop.permute.xlu1 %508 }
 0x600   :  { %v520_v57 = vsel %vm2416_vm4, %v518_v55, %v509_v56  ;;  %v1599_v55 = vld [vmem:[%s2407_s3 + $0x5] ss:$0 sm:$0xff] }
 0x601   :  { %v522_v59 = vsel %vm2415_vm5, %v520_v57, %v516_v53 }
 0x602   :  { %v526_v62 = vrot.slane %v522_v59, 7 }
 0x606   :  { %v492_v63 = vpop.permute.xlu0 %491 }
 0x607   :  { %v498_v1 = vsel %vm2415_vm5, %v496_v61, %v492_v63  ;;  %v511_v2 = vpop.permute.xlu1 %510 }
 0x608   :  { %v521_v3 = vsel %vm2416_vm4, %v519_v0, %v511_v2  ;;  %v530_v5 = vsel %vm269_vm15, %v498_v1, %v526_v62  ;;  %v1600_v1 = vld [vmem:[%s2407_s3 + $0x6] ss:$0 sm:$0xff] }
 0x609   :  { %v523_v6 = vsel %vm2415_vm5, %v521_v3, %v516_v53  ;;  %1510 = vmatmul.msk.f32.vlgmr.msrb.gmra.mxu0 %vm133_vm0, %v530_v5 }
 0x60a   :  { %v527_v7 = vrot.slane %v523_v6, 7 }
 0x60c   :  { %v528_v8 = vsel %vm252_vm9, %v526_v62, %v527_v7 }
 0x611   :  { %1511 = vmatmul.msk.f32.gmra.mxu0 %vm133_vm0, %v528_v8 }
 0x686   :  { %v558_v9 = vpop.f32.mrf.mxu0 }
 0x687   :  { %v559_v10 = vadd.f32 %v1597_v4, %v558_v9 }
 0x689   :  { %v2062_v12 = vadd.f32 %v559_v10, %v1883_v40 }
 0x68b   :  { %v566_v13 = vsel %vm133_vm0, %v2062_v12, 0.0 }
 0x68c   :  { %567 = vadd.xlane.f32.xlu0 %v566_v13 }
 0x68e   :  { %v561_v14 = vpop.f32.mrf.mxu0 }
 0x68f   :  { %v562_v15 = vadd.f32 %v1597_v4, %v561_v14  ;;  %v745_v4 = vld [vmem:[%s2411_s7 + $0x38] sm:$0xff]  ;;  %v744_v14 = vld [vmem:[%s2411_s7 + $0x30] sm:$0xff] }
 0x690   :  { %762 = vmatpush.msrb.mxu3 %v745_v4 }
 0x691   :  { %v2067_v17 = vadd.f32 %v562_v15, %v1890_v46 }
 0x692   :  { %763 = vmatpush.msrb.mxu3 %v744_v14 }
 0x693   :  { %v569_v18 = vsel %vm137_vm1, %v2067_v17, 0.0 }
 0x694   :  { %570 = vadd.xlane.f32.xlu2 %v569_v18 }
 0x6ff   :  { %v568_v19 = vpop.xlane.xlu0 %567 }
 0x700   :  { %v572_v20 = vmul.f32 %v568_v19, %v1894_v54 }
 0x702   :  { %v574_v22 = vsub.f32 %v2062_v12, %v572_v20  ;;  %v743_v20 = vld [vmem:[%s2411_s7 + $0x28] sm:$0xff] }
 0x703   :  { %764 = vmatpush.msrb.mxu3 %v743_v20 }
 0x704   :  { %v576_v40 = vmul.f32 %v574_v22, %v574_v22 }
 0x706   :  { %v578_v23 = vsel %vm133_vm0, %v576_v40, 0.0 }
 0x707   :  { %579 = vadd.xlane.f32.xlu1 %v578_v23  ;;  %v571_v24 = vpop.xlane.xlu2 %570 }
 0x708   :  { %v573_v25 = vmul.f32 %v571_v24, %v1894_v54  ;;  %v742_v24 = vld [vmem:[%s2411_s7 + $0x20] sm:$0xff] }
 0x709   :  { %765 = vmatpush.msrb.mxu3 %v742_v24 }
 0x70a   :  { %v575_v27 = vsub.f32 %v2067_v17, %v573_v25 }
 0x70c   :  { %v577_v46 = vmul.f32 %v575_v27, %v575_v27 }
 0x70e   :  { %v581_v28 = vsel %vm137_vm1, %v577_v46, 0.0 }
 0x70f   :  { %582 = vadd.xlane.f32.xlu0 %v581_v28  ;;  %v741_v28 = vld [vmem:[%s2411_s7 + $0x18] sm:$0xff] }
 0x710   :  { %766 = vmatpush.msrb.mxu3 %v741_v28 }
 0x712   :  { %767 = vmatpush.msrb.mxu3 %v740_v33 }
 0x77a   :  { %v580_v34 = vpop.xlane.xlu1 %579 }
 0x77b   :  { %v584_v35 = vmul.f32 %v580_v34, %v1894_v54 }
 0x77d   :  { %v586_v36 = vadd.f32 1e-05, %v584_v35 }
 0x77f   :  { %1639 = vrsqrt.f32 %v586_v36  ;;  %vm594_vm7 = vweird.f32 %v586_v36 }
 0x782   :  { %v583_v37 = vpop.xlane.xlu0 %582 }
 0x783   :  { %v585_v38 = vmul.f32 %v583_v37, %v1894_v54 }
 0x785   :  { %v1640_v39 = vpop.eup %1639  ;;  %v587_v41 = vadd.f32 1e-05, %v585_v38  ;;  %v739_v38 = vld [vmem:[%s2411_s7 + $0x8] sm:$0xff] }
 0x786   :  { %v589_v42 = vmul.f32 %v1640_v39, %v586_v36  ;;  %vm595_vm6 = vweird.f32 %v1640_v39  ;;  %768 = vmatpush.msrb.mxu3 %v739_v38 }
 0x787   :  { %1641 = vrsqrt.f32 %v587_v41  ;;  %vm596_vm8 = vmor %vm594_vm7, %vm595_vm6  ;;  %vm604_vm4 = vweird.f32 %v587_v41 }
 0x788   :  { %v590_v43 = vmul.f32 %v1640_v39, %v589_v42 }
 0x78a   :  { %v591_v44 = vmul.f32 0.5, %v590_v43  ;;  %v738_v43 = vld [vmem:[%s2411_s7] sm:$0xff] }
 0x78b   :  { %769 = vmatpush.msrb.mxu3 %v738_v43 }
 0x78c   :  { %v592_v45 = vsub.f32 1.5, %v591_v44 }
 0x78d   :  { %v1642_v47 = vpop.eup %1641 }
 0x78e   :  { %v593_v48 = vmul.f32 %v1640_v39, %v592_v45  ;;  %v599_v49 = vmul.f32 %v1642_v47, %v587_v41  ;;  %vm605_vm5 = vweird.f32 %v1642_v47 }
 0x78f   :  { %vm606_vm3 = vmor %vm604_vm4, %vm605_vm5 }
 0x790   :  { %v597_v51 = vsel %vm596_vm8, %v1640_v39, %v593_v48  ;;  %v600_v52 = vmul.f32 %v1642_v47, %v599_v49 }
 0x791   :  { %v608_v53 = vmul.f32 %v597_v51, %v574_v22 }
 0x792   :  { %v601_v56 = vmul.f32 0.5, %v600_v52 }
 0x793   :  { %v611_v57 = vmul.f32 %v1598_v50, %v608_v53 }
 0x794   :  { %v602_v58 = vsub.f32 1.5, %v601_v56 }
 0x795   :  { %v614_v59 = vadd.f32 %v1599_v55, %v611_v57 }
 0x796   :  { %v603_v60 = vmul.f32 %v1642_v47, %v602_v58 }
 0x797   :  { %1512 = vmatmul.msk.f32.vlgmr.msrb.gmra.mxu1 %vm133_vm0, %v614_v59 }
 0x798   :  { %v607_v61 = vsel %vm606_vm3, %v1642_v47, %v603_v60 }
 0x799   :  { %v609_v62 = vmul.f32 %v607_v61, %v575_v27 }
 0x79b   :  { %v612_v63 = vmul.f32 %v1598_v50, %v609_v62 }
 0x79d   :  { %v615_v0 = vadd.f32 %v1599_v55, %v612_v63 }
 0x79f   :  { %1513 = vmatmul.msk.f32.gmra.mxu1 %vm133_vm0, %v615_v0 }
 0x814   :  { %v644_v2 = vpop.f32.mrf.mxu1 }
 0x815   :  { %v2102_v3 = vadd.f32 %v1600_v1, %v644_v2 }
 0x817   :  { %v2105_v5 = vmul.f32 0.70710677, %v2102_v3  ;;  %v650_v33 = vmul.f32 0.5, %v2102_v3 }
 0x819   :  { %v654_v6 = vmul.f32 %v2105_v5, %v2105_v5 }
 0x81b   :  { %v655_v7 = vmin.f32 %v654_v6, 16.0 }
 0x81c   :  { %v647_v8 = vpop.f32.mrf.mxu1 }
 0x81d   :  { %v656_v9 = vmul.f32 2.1237322e-06, %v655_v7  ;;  %v667_v10 = vmul.f32 3.8918573e-05, %v655_v7  ;;  %v2112_v13 = vadd.f32 %v1600_v1, %v647_v8 }
 0x81f   :  { %v657_v15 = vadd.f32 0.00028619796, %v656_v9  ;;  %v668_v18 = vadd.f32 0.001143296, %v667_v10  ;;  %v2118_v19 = vmul.f32 0.70710677, %v2112_v13 }
 0x821   :  { %v658_v22 = vmul.f32 %v657_v15, %v655_v7  ;;  %v669_v40 = vmul.f32 %v668_v18, %v655_v7  ;;  %v694_v23 = vmul.f32 %v2118_v19, %v2118_v19 }
 0x823   :  { %v670_v25 = vadd.f32 0.014752088, %v669_v40  ;;  %v659_v27 = vadd.f32 0.0036580483, %v658_v22  ;;  %v695_v46 = vmin.f32 %v694_v23, 16.0 }
 0x825   :  { %v671_v29 = vmul.f32 %v670_v25, %v655_v7  ;;  %v696_v30 = vmul.f32 2.1237322e-06, %v695_v46  ;;  %v707_v32 = vmul.f32 3.8918573e-05, %v695_v46  ;;  %v660_v35 = vmul.f32 %v659_v27, %v655_v7 }
 0x827   :  { %v672_v34 = vadd.f32 0.112945676, %v671_v29  ;;  %v697_v36 = vadd.f32 0.00028619796, %v696_v30  ;;  %v708_v37 = vadd.f32 0.001143296, %v707_v32 }
 0x828   :  { %v661_v45 = vadd.f32 0.05243302, %v660_v35 }
 0x829   :  { %v673_v39 = vmul.f32 %v672_v34, %v655_v7  ;;  %v698_v41 = vmul.f32 %v697_v36, %v695_v46  ;;  %v709_v42 = vmul.f32 %v708_v37, %v695_v46 }
 0x82a   :  { %v662_v52 = vmul.f32 %v661_v45, %v655_v7 }
 0x82b   :  { %v674_v44 = vadd.f32 0.4994258, %v673_v39  ;;  %v710_v47 = vadd.f32 0.014752088, %v709_v42  ;;  %v699_v49 = vadd.f32 0.0036580483, %v698_v41 }
 0x82c   :  { %v663_v57 = vadd.f32 0.18741608, %v662_v52  ;;  %v651_v42 = vmul.f32 0.5, %v2112_v13 }
 0x82d   :  { %v675_v48 = vmul.f32 %v674_v44, %v655_v7  ;;  %v711_v50 = vmul.f32 %v710_v47, %v695_v46  ;;  %v700_v55 = vmul.f32 %v699_v49, %v695_v46  ;;  %v1601_v44 = vld [vmem:[%s2407_s3 + $0x7] ss:$0 sm:$0xff] }
 0x82e   :  { %v664_v62 = vmul.f32 %v663_v57, %v655_v7 }
 0x82f   :  { %v676_v51 = vadd.f32 1.0, %v675_v48  ;;  %v712_v53 = vadd.f32 0.112945676, %v711_v50  ;;  %v701_v59 = vadd.f32 0.05243302, %v700_v55 }
 0x830   :  { %v665_v8 = vadd.f32 1.1283791, %v664_v62  ;;  %v1520_v62 = vld [vmem:[%s2408_s4 + $0x30] sm:$0xff] }
 0x831   :  { %1643 = vrcp.f32 %v676_v51  ;;  %v713_v56 = vmul.f32 %v712_v53, %v695_v46  ;;  %v702_v1 = vmul.f32 %v701_v59, %v695_v46  ;;  %v688_v6 = vand.u32 2147483648, %v676_v51 }
 0x832   :  { %v686_v9 = vand.u32 2147483647, %v676_v51  ;;  %vm682_vm4 = vweird.f32 %v676_v51  ;;  %v666_v20 = vmul.f32 %v665_v8, %v2105_v5 }
 0x833   :  { %v714_v58 = vadd.f32 0.4994258, %v713_v56  ;;  %v703_v10 = vadd.f32 0.18741608, %v702_v1  ;;  %v689_v15 = vor.u32 1.1754944e-38, %v688_v6 }
 0x834   :  { %vm687_vm6 = vcmp.eq.f32.partialorder %v686_v9, 8.507059e+37 }
 0x835   :  { %v715_v60 = vmul.f32 %v714_v58, %v695_v46  ;;  %v704_v40 = vmul.f32 %v703_v10, %v695_v46 }
 0x837   :  { %v1644_v61 = vpop.eup %1643  ;;  %v716_v0 = vadd.f32 1.0, %v715_v60  ;;  %v705_v29 = vadd.f32 1.1283791, %v704_v40  ;;  %v1602_v40 = vld [vmem:[%s2407_s3 + $0x8] ss:$0 sm:$0xff] }
 0x838   :  { %v678_v63 = vmul.f32 %v1644_v61, %v676_v51  ;;  %vm683_vm3 = vweird.f32 %v1644_v61 }
 0x839   :  { %1645 = vrcp.f32 %v716_v0  ;;  %vm684_vm5 = vmor %vm682_vm4, %vm683_vm3  ;;  %v728_v28 = vand.u32 2147483648, %v716_v0  ;;  %v726_v32 = vand.u32 2147483647, %v716_v0  ;;  %vm722_vm8 = vweird.f32 %v716_v0 }
 0x83a   :  { %v679_v2 = vsub.f32 1.0, %v678_v63  ;;  %vm2418_vm3 = vcmask 523264   ;;  %v706_v46 = vmul.f32 %v705_v29, %v2118_v19  ;;  %v1519_v63 = vld [vmem:[%s2408_s4 + $0x28] sm:$0xff] }
 0x83b   :  { %v729_v36 = vor.u32 1.1754944e-38, %v728_v28  ;;  %v1603_v28 = vld [vmem:[%s2407_s3 + $0x9] ss:$0 sm:$0xff] }
 0x83c   :  { %v680_v4 = vmul.f32 %v1644_v61, %v679_v2 }
 0x83e   :  { %v681_v14 = vadd.f32 %v1644_v61, %v680_v4 }
 0x83f   :  { %v1646_v18 = vpop.eup %1645 }
 0x840   :  { %v685_v22 = vsel %vm684_vm5, %v1644_v61, %v681_v14  ;;  %v718_v23 = vmul.f32 %v1646_v18, %v716_v0  ;;  %vm723_vm7 = vweird.f32 %v1646_v18  ;;  %vm727_vm5 = vcmp.eq.f32.partialorder %v726_v32, 8.507059e+37  ;;  %v1521_v61 = vld [vmem:[%s2408_s4 + $0x38] sm:$0xff]  ;;  %v1518_v0 = vld [vmem:[%s2408_s4 + $0x20] sm:$0xff] }
 0x841   :  { %v690_v7 = vsel %vm687_vm6, %v689_v15, %v685_v22  ;;  %vm724_vm4 = vmor %vm722_vm8, %vm723_vm7  ;;  %861 = vmatpush.msra.mxu0 %v1521_v61 }
 0x842   :  { %v691_v24 = vmul.f32 %v690_v7, %v666_v20  ;;  %v719_v25 = vsub.f32 1.0, %v718_v23 }
 0x843   :  { %862 = vmatpush.msra.mxu0 %v1520_v62 }
 0x844   :  { %v1514_v27 = vclamps-f32 %v691_v24, 1.0  ;;  %v720_v30 = vmul.f32 %v1646_v18, %v719_v25 }
 0x845   :  { %863 = vmatpush.msra.mxu0 %v1519_v63 }
 0x846   :  { %v734_v34 = vadd.f32 1.0, %v1514_v27  ;;  %v721_v35 = vadd.f32 %v1646_v18, %v720_v30 }
 0x847   :  { %864 = vmatpush.msra.mxu0 %v1518_v0 }
 0x848   :  { %v736_v5 = vmul.f32 %v734_v34, %v650_v33  ;;  %v725_v37 = vsel %vm724_vm4, %v1646_v18, %v721_v35 }
 0x849   :  { %v730_v38 = vsel %vm727_vm5, %v729_v36, %v725_v37 }
 0x84a   :  { %1516 = vmatmul.msk.f32.vlgmr.msrb.gmra.mxu3 %vm2418_vm3, %v736_v5  ;;  %v731_v39 = vmul.f32 %v730_v38, %v706_v46  ;;  %v1604_v38 = vld [vmem:[%s2407_s3 + $0xa] ss:$0 sm:$0xff] }
 0x84c   :  { %v1515_v41 = vclamps-f32 %v731_v39, 1.0 }
 0x84e   :  { %v735_v43 = vadd.f32 1.0, %v1515_v41 }
 0x850   :  { %v737_v3 = vmul.f32 %v735_v43, %v651_v42 }
 0x852   :  { %1517 = vmatmul.msk.f32.gmra.mxu3 %vm2418_vm3, %v737_v3 }
 0x8cd   :  { %v771_v45 = vpop.f32.mrf.mxu3 }
 0x8ce   :  { %v772_v47 = vadd.f32 %v1601_v44, %v771_v45 }
 0x8d0   :  { %v2150_v19 = vadd.f32 %v772_v47, %v2062_v12 }
 0x8d2   :  { %v787_v48 = vsel %vm133_vm0, %v2150_v19, 0.0 }
 0x8d3   :  { %788 = vadd.xlane.f32.xlu2 %v787_v48 }
 0x8d5   :  { %v774_v49 = vpop.f32.mrf.mxu3 }
 0x8d6   :  { %v775_v50 = vadd.f32 %v1601_v44, %v774_v49 }
 0x8d8   :  { %v2155_v13 = vadd.f32 %v775_v50, %v2067_v17 }
 0x8da   :  { %v790_v51 = vsel %vm137_vm1, %v2155_v13, 0.0 }
 0x8db   :  { %791 = vadd.xlane.f32.xlu1 %v790_v51 }
 0x946   :  { %v789_v52 = vpop.xlane.xlu2 %788 }
 0x947   :  { %v793_v53 = vmul.f32 %v789_v52, %v1894_v54 }
 0x949   :  { %v795_v55 = vsub.f32 %v2150_v19, %v793_v53 }
 0x94b   :  { %v797_v12 = vmul.f32 %v795_v55, %v795_v55 }
 0x94d   :  { %v799_v56 = vsel %vm133_vm0, %v797_v12, 0.0 }
 0x94e   :  { %800 = vadd.xlane.f32.xlu0 %v799_v56  ;;  %v792_v57 = vpop.xlane.xlu1 %791 }
 0x94f   :  { %v794_v58 = vmul.f32 %v792_v57, %v1894_v54 }
 0x951   :  { %v796_v59 = vsub.f32 %v2155_v13, %v794_v58 }
 0x953   :  { %v798_v17 = vmul.f32 %v796_v59, %v796_v59 }
 0x955   :  { %v802_v60 = vsel %vm137_vm1, %v798_v17, 0.0 }
 0x956   :  { %803 = vadd.xlane.f32.xlu2 %v802_v60 }
 0x9c1   :  { %v801_v1 = vpop.xlane.xlu0 %800 }
 0x9c2   :  { %v805_v2 = vmul.f32 %v801_v1, %v1894_v54 }
 0x9c4   :  { %v807_v6 = vadd.f32 1e-05, %v805_v2 }
 0x9c6   :  { %1647 = vrsqrt.f32 %v807_v6  ;;  %vm815_vm7 = vweird.f32 %v807_v6 }
 0x9c9   :  { %v804_v8 = vpop.xlane.xlu2 %803 }
 0x9ca   :  { %v806_v4 = vmul.f32 %v804_v8, %v1894_v54 }
 0x9cc   :  { %v1648_v9 = vpop.eup %1647  ;;  %v808_v14 = vadd.f32 1e-05, %v806_v4 }
 0x9cd   :  { %v810_v10 = vmul.f32 %v1648_v9, %v807_v6  ;;  %vm816_vm6 = vweird.f32 %v1648_v9 }
 0x9ce   :  { %1649 = vrsqrt.f32 %v808_v14  ;;  %vm817_vm8 = vmor %vm815_vm7, %vm816_vm6  ;;  %vm825_vm5 = vweird.f32 %v808_v14 }
 0x9cf   :  { %v811_v15 = vmul.f32 %v1648_v9, %v810_v10 }
 0x9d1   :  { %v812_v18 = vmul.f32 0.5, %v811_v15 }
 0x9d3   :  { %v813_v20 = vsub.f32 1.5, %v812_v18 }
 0x9d4   :  { %v1650_v22 = vpop.eup %1649 }
 0x9d5   :  { %v814_v7 = vmul.f32 %v1648_v9, %v813_v20  ;;  %v820_v23 = vmul.f32 %v1650_v22, %v808_v14  ;;  %vm826_vm4 = vweird.f32 %v1650_v22 }
 0x9d6   :  { %vm827_vm3 = vmor %vm825_vm5, %vm826_vm4 }
 0x9d7   :  { %v818_v24 = vsel %vm817_vm8, %v1648_v9, %v814_v7  ;;  %v821_v27 = vmul.f32 %v1650_v22, %v820_v23 }
 0x9d8   :  { %v829_v25 = vmul.f32 %v818_v24, %v795_v55 }
 0x9d9   :  { %v822_v30 = vmul.f32 0.5, %v821_v27 }
 0x9da   :  { %v832_v29 = vmul.f32 %v1602_v40, %v829_v25 }
 0x9db   :  { %v823_v32 = vsub.f32 1.5, %v822_v30 }
 0x9dc   :  { %v835_v33 = vadd.f32 %v1603_v28, %v832_v29 }
 0x9dd   :  { %v824_v34 = vmul.f32 %v1650_v22, %v823_v32 }
 0x9de   :  { %1522 = vmatmul.msk.f32.vlgmr.msra.gmra.mxu0 %vm133_vm0, %v835_v33 }
 0x9df   :  { %v828_v35 = vsel %vm827_vm3, %v1650_v22, %v824_v34 }
 0x9e0   :  { %v830_v5 = vmul.f32 %v828_v35, %v796_v59 }
 0x9e2   :  { %v833_v36 = vmul.f32 %v1602_v40, %v830_v5 }
 0x9e4   :  { %v836_v46 = vadd.f32 %v1603_v28, %v833_v36 }
 0x9e6   :  { %1523 = vmatmul.msk.f32.gmra.mxu0 %vm133_vm0, %v836_v46 }
 0xa5b   :  { %v866_v37 = vpop.f32.mrf.mxu0 }
 0xa5c   :  { %v867_v39 = vadd.f32 %v1604_v38, %v866_v37 }
 0xa5e   :  { %v905_v43 = vrot.slane %v867_v39, 2  ;;  %v896_v3 = vrot.slane %v867_v39, 7  ;;  %v890_v44 = vrot.slane %v867_v39, 4  ;;  %v881_v45 = vrot.slane %v867_v39, 1 }
 0xa5f   :  { %v873_v12 = vrot.slane %v867_v39, 3  ;;  %v877_v56 = vrot.slane %v867_v39, 6 }
 0xa63   :  { %v869_v41 = vpop.f32.mrf.mxu0 }
 0xa64   :  { %v870_v42 = vadd.f32 %v1604_v38, %v869_v41 }
 0xa66   :  { %v906_v47 = vrot.slane %v870_v42, 2  ;;  %v897_v48 = vrot.slane %v870_v42, 7  ;;  %v891_v49 = vrot.slane %v870_v42, 4  ;;  %v886_v50 = vrot.slane %v870_v42, 1 }
 0xa68   :  { %v907_v51 = vsel %vm262_vm12, %v905_v43, %v906_v47  ;;  %v898_v52 = vsel %vm252_vm9, %v896_v3, %v897_v48  ;;  %v892_v53 = vsel %vm245_vm10, %v890_v44, %v891_v49  ;;  %v887_v55 = vsel %vm240_vm11, %v881_v45, %v886_v50 }
 0xa69   :  { %908 = vrot.lane.b32.xlu0 %v907_v51, %s1710_s22  ;;  %901 = vrot.lane.b32.xlu1 %v898_v52, %s1708_s20 }
 0xa6a   :  { %893 = vrot.lane.b32.xlu2 %v892_v53, %s1709_s21 }
 0xa71   :  { %899 = vrot.lane.b32.xlu0 %v896_v3, %s1708_s20  ;;  %882 = vrot.lane.b32.xlu1 %v881_v45, %s1710_s22 }
 0xa72   :  { %874 = vrot.lane.b32.xlu2 %v873_v12, %s1709_s21 }
 0xa79   :  { %878 = vrot.lane.b32.xlu0 %v877_v56, %s1708_s20  ;;  %s1716_s20 = smov [#allocation2]  }
 0xa7a   :  { %s1482_s21 = sshll.u32 %s1716_s20, 4  ;;  %s1483_s21 = int_to_ptr.vmem [resolvable:$true] %s1482_s21 }
 0xac4   :  { %v894_v17 = vpop.permute.xlu2 %893 }
 0xac5   :  { %v915_v60 = vsel %vm252_vm9, %v886_v50, %v894_v17 }
 0xacc   :  { %v875_v1 = vpop.permute.xlu2 %874 }
 0xacd   :  { %v2210_v8 = vsel %vm269_vm15, %v867_v39, %v875_v1 }
 0xadb   :  { %v909_v57 = vpop.permute.xlu0 %908  ;;  %v902_v58 = vpop.permute.xlu1 %901 }
 0xadc   :  { %v917_v59 = vsel %vm277_vm13, %v902_v58, %v909_v57 }
 0xadd   :  { %931 = vrot.lane.b32.xlu1 %v917_v59, %s1711_s23 }
 0xae3   :  { %v900_v61 = vpop.permute.xlu0 %899  ;;  %v883_v62 = vpop.permute.xlu1 %882 }
 0xae4   :  { %v916_v63 = vsel %vm262_vm12, %v915_v60, %v900_v61  ;;  %v914_v0 = vsel %vm245_vm10, %v883_v62, %v887_v55  ;;  %vm2419_vm10 = vcmask 326656  }
 0xae5   :  { %929 = vrot.lane.b32.xlu2 %v916_v63, %s1711_s23  ;;  %927 = vrot.lane.b32.xlu0 %v914_v0, %s1711_s23  ;;  %vm2422_vm3 = vmmov %vm2419_vm10  ;;  %v1584_v37 = vpack.i.bf16 %v916_v63, %v917_v59 }
 0xae6   :  { %vm2423_vm6 = vmmov %vm2422_vm3 }
 0xae7   :  { %vm2424_vm7 = vmmov %vm2422_vm3 }
 0xae8   :  { %vm2425_vm8 = vmmov %vm2422_vm3 }
 0xae9   :  { %vm2426_vm4 = vmmov %vm2422_vm3 }
 0xaea   :  { %vm2427_vm5 = vmmov %vm2422_vm3 }
 0xaeb   :  { %v879_v2 = vpop.permute.xlu0 %878 }
 0xaec   :  { %v912_v6 = vsel %vm271_vm14, %v875_v1, %v879_v2  ;;  %vm2421_vm14 = vmmov %vm2419_vm10 }
 0xaed   :  { %923 = vrot.lane.b32.xlu2 %v2210_v8, %s1711_s23  ;;  %v913_v4 = vsel %vm240_vm11, %v912_v6, %v883_v62  ;;  %vm2420_vm11 = vmmov %vm2419_vm10 }
 0xaee   :  { %925 = vrot.lane.b32.xlu1 %v913_v4, %s1711_s23 }
 0xb3f   :  { %v930_v10 = vpop.permute.xlu2 %929 }
 0xb47   :  { %v924_v18 = vpop.permute.xlu2 %923 }
 0xb4f   :  { %v932_v9 = vpop.permute.xlu1 %931 }
 0xb50   :  { %1524 = vmatpush.xpose.msk.msra.mxu2 %vm294_vm2, %v932_v9 }
 0xb54   :  { %1525 = vmatpush.xpose.msk.msra.mxu2 %vm294_vm2, %v930_v10 }
 0xb57   :  { %v928_v14 = vpop.permute.xlu0 %927 }
 0xb58   :  { %1526 = vmatpush.xpose.msk.msra.mxu2 %vm294_vm2, %v928_v14 }
 0xb60   :  { %v926_v15 = vpop.permute.xlu1 %925 }
 0xb61   :  { %1527 = vmatpush.xpose.msk.msra.mxu2 %vm294_vm2, %v926_v15 }
 0xb65   :  { %1528 = vmatpush.xpose.msk.msra.mxu2 %vm294_vm2, %v924_v18 }
 0xb68   :  { %1529 = vmatmul.msk.f32.vlgmr.msra.gmra.mxu2 %vm294_vm2, %v2210_v8 }
 0xb70   :  { %1530 = vmatmul.msk.f32.gmra.mxu2 %vm294_vm2, %v913_v4 }
 0xb78   :  { %1531 = vmatmul.msk.f32.gmra.mxu2 %vm294_vm2, %v914_v0 }
 0xb80   :  { %1532 = vmatmul.msk.f32.gmra.mxu2 %vm294_vm2, %v916_v63 }
 0xb88   :  { %1533 = vmatmul.msk.f32.gmra.mxu2 %vm294_vm2, %v917_v59 }
 0xbeb   :  { %v970_v20 = vpop.f32.mrf.mxu2 }
 0xbec   :  { %v985_v22 = vmul.f32 0.35355338, %v970_v20 }
 0xbee   :  { %v990_v7 = vadd.f32 %v985_v22, %v1975_v11 }
 0xbf0   :  { %v995_v40 = vsel %vm2419_vm10, %v990_v7, -inf  ;;  %vm2428_vm10 = vmmov %vm2422_vm3 }
 0xbf1   :  { %996 = vmax.xlane.f32.xlu0 %v995_v40 }
 0xbf3   :  { %v973_v23 = vpop.f32.mrf.mxu2 }
 0xbf4   :  { %v986_v24 = vmul.f32 0.35355338, %v973_v23 }
 0xbf6   :  { %v991_v25 = vadd.f32 %v986_v24, %v1982_v16 }
 0xbf8   :  { %v998_v27 = vsel %vm2420_vm11, %v991_v25, -inf  ;;  %vm2429_vm11 = vmmov %vm2422_vm3 }
 0xbf9   :  { %999 = vmax.xlane.f32.xlu1 %v998_v27 }
 0xbfb   :  { %v976_v28 = vpop.f32.mrf.mxu2 }
 0xbfc   :  { %v987_v29 = vmul.f32 0.35355338, %v976_v28 }
 0xbfe   :  { %v992_v30 = vadd.f32 %v987_v29, %v1989_v21  ;;  %v1589_v21 = vpack.i.bf16 %v913_v4, %v914_v0 }
 0xc00   :  { %v1001_v32 = vsel %vm2421_vm14, %v992_v30, -inf  ;;  %vm2430_vm14 = vmmov %vm2422_vm3 }
 0xc01   :  { %1002 = vmax.xlane.f32.xlu2 %v1001_v32 }
 0xc03   :  { %v979_v33 = vpop.f32.mrf.mxu2 }
 0xc04   :  { %v988_v34 = vmul.f32 0.35355338, %v979_v33 }
 0xc06   :  { %v993_v11 = vadd.f32 %v988_v34, %v1996_v26 }
 0xc08   :  { %v1004_v35 = vsel %vm2422_vm3, %v993_v11, -inf }
 0xc09   :  { %1005 = vmax.xlane.f32.xlu0 %v1004_v35 }
 0xc0b   :  { %v982_v5 = vpop.f32.mrf.mxu2 }
 0xc0c   :  { %v989_v36 = vmul.f32 0.35355338, %v982_v5 }
 0xc0e   :  { %v994_v16 = vadd.f32 %v989_v36, %v2003_v31 }
 0xc10   :  { %v1007_v46 = vsel %vm2423_vm6, %v994_v16, -inf  ;;  %vm2431_vm6 = vmmov %vm2422_vm3 }
 0xc11   :  { %1008 = vmax.xlane.f32.xlu1 %v1007_v46 }
 0xc1d   :  { %1585 = vrot.lane.b32.xlu0 %v1584_v37, %s1712_s11 }
 0xc2a   :  { %1590 = vrot.lane.b32.xlu1 %v1589_v21, %s1712_s11 }
 0xc64   :  { %v997_v38 = vpop.xlane.xlu0 %996 }
 0xc65   :  { %v1010_v39 = vsub.f32 %v990_v7, %v997_v38 }
 0xc67   :  { %v1015_v41 = vmul.f32 1.442695, %v1010_v39 }
 0xc69   :  { %1651 = vpow2.f32 %v1015_v41 }
 0xc6c   :  { %v1000_v26 = vpop.xlane.xlu1 %999 }
 0xc6d   :  { %v1011_v42 = vsub.f32 %v991_v25, %v1000_v26  ;;  %v1542_v26 = vld [vmem:[%s2409_s5 + $0x38] sm:$0xff] }
 0xc6e   :  { %1189 = vmatpush.msra.mxu3 %v1542_v26 }
 0xc6f   :  { %v1652_v43 = vpop.eup %1651  ;;  %v1017_v3 = vmul.f32 1.442695, %v1011_v42  ;;  %v1541_v42 = vld [vmem:[%s2409_s5 + $0x30] sm:$0xff] }
 0xc70   :  { %v1025_v44 = vsel %vm2424_vm7, %v1652_v43, 0.0  ;;  %vm2432_vm7 = vmmov %vm2422_vm3  ;;  %1190 = vmatpush.msra.mxu3 %v1541_v42  ;;  %v1607_v42 = vld [vmem:[%s2407_s3 + $0xd] ss:$0 sm:$0xff] }
 0xc71   :  { %1653 = vpow2.f32 %v1017_v3  ;;  %1026 = vadd.xlane.f32.xlu2 %v1025_v44  ;;  %v1539_v3 = vld [vmem:[%s2409_s5 + $0x20] sm:$0xff] }
 0xc74   :  { %v1003_v31 = vpop.xlane.xlu2 %1002 }
 0xc75   :  { %v1012_v45 = vsub.f32 %v992_v30, %v1003_v31 }
 0xc77   :  { %v1654_v47 = vpop.eup %1653  ;;  %v1019_v48 = vmul.f32 1.442695, %v1012_v45 }
 0xc78   :  { %v1028_v49 = vsel %vm2425_vm8, %v1654_v47, 0.0 }
 0xc79   :  { %1655 = vpow2.f32 %v1019_v48  ;;  %1029 = vadd.xlane.f32.xlu2 %v1028_v49 }
 0xc7c   :  { %v1006_v50 = vpop.xlane.xlu0 %1005 }
 0xc7d   :  { %v1013_v51 = vsub.f32 %v993_v11, %v1006_v50 }
 0xc7f   :  { %v1656_v52 = vpop.eup %1655  ;;  %v1021_v53 = vmul.f32 1.442695, %v1013_v51 }
 0xc80   :  { %v1031_v55 = vsel %vm2426_vm4, %v1656_v52, 0.0 }
 0xc81   :  { %1657 = vpow2.f32 %v1021_v53  ;;  %1032 = vadd.xlane.f32.xlu0 %v1031_v55 }
 0xc84   :  { %v1009_v17 = vpop.xlane.xlu1 %1008 }
 0xc85   :  { %v1014_v63 = vsub.f32 %v994_v16, %v1009_v17 }
 0xc87   :  { %v1658_v12 = vpop.eup %1657  ;;  %v1023_v0 = vmul.f32 1.442695, %v1014_v63  ;;  %v1605_v63 = vld [vmem:[%s2407_s3 + $0xb] ss:$0 sm:$0xff] }
 0xc88   :  { %v1034_v56 = vsel %vm2427_vm5, %v1658_v12, 0.0 }
 0xc89   :  { %1035 = vadd.xlane.f32.xlu1 %v1034_v56  ;;  %1659 = vpow2.f32 %v1023_v0 }
 0xc8f   :  { %v1586_v57 = vpop.permute.xlu0 %1585  ;;  %v1660_v1 = vpop.eup %1659 }
 0xc90   :  { %v1587_v58 = vunpack.i.l.bf16 %v1586_v57  ;;  %v1588_v59 = vunpack.i.h.bf16 %v1586_v57  ;;  %v1037_v2 = vsel %vm2428_vm10, %v1660_v1, 0.0 }
 0xc91   :  { %1050 = vrot.lane.b32.xlu2 %v2210_v8, %s1712_s11  ;;  %s1484_s11 = sshll.u32 %s2414_s10, 4  ;;  %s1485_s11 = int_to_ptr.hbm [resolvable:$true] %s1484_s11 }
 0xc92   :  { %1091 = vmatpush.msra.mxu1 %v1587_v58 }
 0xc94   :  { %1092 = vmatpush.msra.mxu1 %v1588_v59 }
 0xc9c   :  { %v1591_v60 = vpop.permute.xlu1 %1590 }
 0xc9d   :  { %v1592_v61 = vunpack.i.l.bf16 %v1591_v60  ;;  %v1593_v62 = vunpack.i.h.bf16 %v1591_v60 }
 0xc9f   :  { %1093 = vmatpush.msra.mxu1 %v1592_v61 }
 0xca1   :  { %1094 = vmatpush.msra.mxu1 %v1593_v62 }
 0xcba   :  { %1038 = vadd.xlane.f32.xlu2 %v1037_v2 }
 0xce4   :  { %v1027_v6 = vpop.xlane.xlu2 %1026 }
 0xce5   :  { %1661 = vrcp.f32 %v1027_v6 }
 0xceb   :  { %v1662_v8 = vpop.eup %1661 }
 0xcec   :  { %v1030_v4 = vpop.xlane.xlu2 %1029  ;;  %v1045_v9 = vmul.f32 %v1662_v8, %v1652_v43  ;;  %v1540_v43 = vld [vmem:[%s2409_s5 + $0x28] sm:$0xff] }
 0xced   :  { %1663 = vrcp.f32 %v1030_v4  ;;  %1191 = vmatpush.msra.mxu3 %v1540_v43 }
 0xcef   :  { %1192 = vmatpush.msra.mxu3 %v1539_v3 }
 0xcf3   :  { %v1664_v15 = vpop.eup %1663 }
 0xcf4   :  { %v1051_v10 = vpop.permute.xlu2 %1050  ;;  %v1033_v14 = vpop.xlane.xlu0 %1032  ;;  %v1046_v18 = vmul.f32 %v1664_v15, %v1654_v47 }
 0xcf5   :  { %1095 = vmatpush.msra.mxu1 %v1051_v10  ;;  %1665 = vrcp.f32 %v1033_v14 }
 0xcf6   :  { %1534 = vmatmul.msk.f32.vlgmr.msra.gmra.mxu1 %vm2429_vm11, %v1045_v9 }
 0xcfb   :  { %v1666_v22 = vpop.eup %1665 }
 0xcfc   :  { %v1036_v20 = vpop.xlane.xlu1 %1035  ;;  %v1047_v7 = vmul.f32 %v1666_v22, %v1656_v52 }
 0xcfd   :  { %1667 = vrcp.f32 %v1036_v20 }
 0xcfe   :  { %1535 = vmatmul.msk.f32.gmra.mxu1 %vm2430_vm14, %v1046_v18 }
 0xd03   :  { %v1668_v40 = vpop.eup %1667 }
 0xd04   :  { %v1048_v23 = vmul.f32 %v1668_v40, %v1658_v12 }
 0xd06   :  { %1536 = vmatmul.msk.f32.gmra.mxu1 %vm2422_vm3, %v1047_v7 }
 0xd0e   :  { %1537 = vmatmul.msk.f32.gmra.mxu1 %vm2431_vm6, %v1048_v23 }
 0xd2d   :  { %v1039_v24 = vpop.xlane.xlu2 %1038 }
 0xd2e   :  { %1669 = vrcp.f32 %v1039_v24 }
 0xd34   :  { %v1670_v25 = vpop.eup %1669 }
 0xd35   :  { %v1049_v27 = vmul.f32 %v1670_v25, %v1660_v1  ;;  %v1547_v25 = vld [vmem:[%s2410_s6 + $0x30] sm:$0xff] }
 0xd37   :  { %1538 = vmatmul.msk.f32.gmra.mxu1 %vm2432_vm7, %v1049_v27  ;;  %v1546_v27 = vld [vmem:[%s2410_s6 + $0x28] sm:$0xff] }
 0xd73   :  { %v1097_v28 = vpop.f32.mrf.mxu1 }
 0xd74   :  { %v1114_v30 = vrot.slane %v1097_v28, 5 }
 0xd7b   :  { %v1100_v29 = vpop.f32.mrf.mxu1 }
 0xd7c   :  { %v1115_v32 = vrot.slane %v1100_v29, 5  ;;  %v1120_v38 = vrot.slane %v1100_v29, 2  ;;  %v1125_v39 = vrot.slane %v1100_v29, 7 }
 0xd7e   :  { %v1116_v33 = vsel %vm277_vm13, %v1114_v30, %v1115_v32  ;;  %vm2434_vm13 = vcmask 195584  }
 0xd7f   :  { %1117 = vrot.lane.b32.xlu2 %v1116_v33, %s1714_s12  ;;  %vm2436_vm4 = vmmov %vm2434_vm13 }
 0xd80   :  { %vm2438_vm10 = vmmov %vm2436_vm4 }
 0xd83   :  { %v1103_v34 = vpop.f32.mrf.mxu1 }
 0xd84   :  { %v1126_v21 = vrot.slane %v1103_v34, 7 }
 0xd86   :  { %v1127_v41 = vsel %vm252_vm9, %v1125_v39, %v1126_v21  ;;  %v1606_v21 = vld [vmem:[%s2407_s3 + $0xc] ss:$0 sm:$0xff] }
 0xd8b   :  { %v1106_v11 = vpop.f32.mrf.mxu1 }
 0xd8c   :  { %v1135_v35 = vrot.slane %v1106_v11, 5  ;;  %v1140_v36 = vrot.slane %v1106_v11, 2 }
 0xd8e   :  { %1136 = vrot.lane.b32.xlu0 %v1135_v35, %s1714_s12 }
 0xdb4   :  { %v1109_v5 = vpop.f32.mrf.mxu1 }
 0xdb5   :  { %v1141_v16 = vrot.slane %v1109_v5, 2  ;;  %v1149_v46 = vrot.slane %v1109_v5, 7 }
 0xdb7   :  { %1150 = vrot.lane.b32.xlu0 %v1149_v46, %s1715_s13  ;;  %v1142_v37 = vsel %vm262_vm12, %v1140_v36, %v1141_v16  ;;  %vm2433_vm12 = vcmask 130048  }
 0xdb8   :  { %1143 = vrot.lane.b32.xlu1 %v1142_v37, %s1713_s9  ;;  %vm2435_vm8 = vmmov %vm2433_vm12 }
 0xdb9   :  { %vm2437_vm5 = vmmov %vm2435_vm8 }
 0xdbf   :  { %1121 = vrot.lane.b32.xlu0 %v1120_v38, %s1713_s9 }
 0xdc0   :  { %1128 = vrot.lane.b32.xlu1 %v1127_v41, %s1715_s13 }
 0xdc8   :  { %1145 = vrot.lane.b32.xlu1 %v1141_v16, %s1713_s9 }
 0xdd9   :  { %v1118_v49 = vpop.permute.xlu2 %1117 }
 0xdda   :  { %v1131_v51 = vsel %vm294_vm2, %v1097_v28, %v1118_v49  ;;  %v1545_v28 = vld [vmem:[%s2410_s6 + $0x20] sm:$0xff] }
 0xe00   :  { %v1137_v44 = vpop.permute.xlu0 %1136 }
 0xe01   :  { %v1153_v47 = vsel %vm294_vm2, %v1103_v34, %v1137_v44  ;;  %v1154_v58 = vsel %vm294_vm2, %v1106_v11, %v1137_v44 }
 0xe29   :  { %v1151_v31 = vpop.permute.xlu0 %1150 }
 0xe2a   :  { %v1144_v45 = vpop.permute.xlu1 %1143 }
 0xe2b   :  { %v1155_v48 = vsel %vm2433_vm12, %v1153_v47, %v1144_v45 }
 0xe2c   :  { %v1157_v50 = vsel %vm2434_vm13, %v1155_v48, %v1151_v31 }
 0xe2d   :  { %v1161_v53 = vrot.slane %v1157_v50, 7 }
 0xe31   :  { %v1122_v52 = vpop.permute.xlu0 %1121 }
 0xe32   :  { %v1132_v55 = vsel %vm2435_vm8, %v1131_v51, %v1122_v52  ;;  %v1129_v12 = vpop.permute.xlu1 %1128  ;;  %v1608_v52 = vld [vmem:[%s2407_s3 + $0xe] ss:$0 sm:$0xff] }
 0xe33   :  { %v1133_v56 = vsel %vm2436_vm4, %v1132_v55, %v1129_v12 }
 0xe34   :  { %v1165_v57 = vsel %vm269_vm15, %v1133_v56, %v1161_v53 }
 0xe35   :  { %1543 = vmatmul.msk.f32.vlgmr.msra.gmra.mxu3 %vm133_vm0, %v1165_v57 }
 0xe3a   :  { %v1146_v59 = vpop.permute.xlu1 %1145 }
 0xe3b   :  { %v1156_v17 = vsel %vm2437_vm5, %v1154_v58, %v1146_v59  ;;  %v1560_v58 = vld [vmem:[%s2411_s7 + $0x78] sm:$0xff] }
 0xe3c   :  { %v1158_v60 = vsel %vm2438_vm10, %v1156_v17, %v1151_v31  ;;  %1399 = vmatpush.msrb.mxu3 %v1560_v58 }
 0xe3d   :  { %v1162_v61 = vrot.slane %v1158_v60, 7  ;;  %v1559_v60 = vld [vmem:[%s2411_s7 + $0x70] sm:$0xff] }
 0xe3e   :  { %1400 = vmatpush.msrb.mxu3 %v1559_v60 }
 0xe3f   :  { %v1163_v62 = vsel %vm252_vm9, %v1161_v53, %v1162_v61 }
 0xe40   :  { %1544 = vmatmul.msk.f32.gmra.mxu3 %vm133_vm0, %v1163_v62 }
 0xeb8   :  { %v1194_v0 = vpop.f32.mrf.mxu3 }
 0xeb9   :  { %v1195_v1 = vadd.f32 %v1605_v63, %v1194_v0  ;;  %v1558_v0 = vld [vmem:[%s2411_s7 + $0x68] sm:$0xff] }
 0xeba   :  { %1401 = vmatpush.msrb.mxu3 %v1558_v0 }
 0xebb   :  { %v2290_v2 = vadd.f32 %v1195_v1, %v2150_v19 }
 0xebd   :  { %v1202_v6 = vsel %vm133_vm0, %v2290_v2, 0.0 }
 0xebe   :  { %1203 = vadd.xlane.f32.xlu0 %v1202_v6 }
 0xec3   :  { %v1197_v4 = vpop.f32.mrf.mxu3 }
 0xec4   :  { %v1198_v8 = vadd.f32 %v1605_v63, %v1197_v4 }
 0xec6   :  { %v1201_v9 = vadd.f32 %v1198_v8, %v2155_v13  ;;  %v1548_v13 = vld [vmem:[%s2410_s6 + $0x38] sm:$0xff]  ;;  %v1557_v8 = vld [vmem:[%s2411_s7 + $0x60] sm:$0xff] }
 0xec7   :  { %1276 = vmatpush.msrb.mxu0 %v1548_v13  ;;  %1402 = vmatpush.msrb.mxu3 %v1557_v8 }
 0xec8   :  { %v1205_v10 = vsel %vm137_vm1, %v1201_v9, 0.0 }
 0xec9   :  { %1206 = vadd.xlane.f32.xlu1 %v1205_v10  ;;  %1277 = vmatpush.msrb.mxu0 %v1547_v25 }
 0xecb   :  { %1278 = vmatpush.msrb.mxu0 %v1546_v27  ;;  %v1553_v27 = vld [vmem:[%s2411_s7 + $0x40] sm:$0xff] }
 0xecd   :  { %1279 = vmatpush.msrb.mxu0 %v1545_v28 }
 0xf31   :  { %v1204_v14 = vpop.xlane.xlu0 %1203 }
 0xf32   :  { %v1208_v15 = vmul.f32 %v1204_v14, %v1894_v54 }
 0xf34   :  { %v1210_v18 = vsub.f32 %v2290_v2, %v1208_v15  ;;  %v1556_v15 = vld [vmem:[%s2411_s7 + $0x58] sm:$0xff] }
 0xf35   :  { %1403 = vmatpush.msrb.mxu3 %v1556_v15 }
 0xf36   :  { %v1212_v20 = vmul.f32 %v1210_v18, %v1210_v18 }
 0xf38   :  { %v1214_v19 = vsel %vm133_vm0, %v1212_v20, 0.0 }
 0xf39   :  { %1215 = vadd.xlane.f32.xlu2 %v1214_v19  ;;  %v1555_v19 = vld [vmem:[%s2411_s7 + $0x50] sm:$0xff] }
 0xf3a   :  { %1404 = vmatpush.msrb.mxu3 %v1555_v19 }
 0xf3c   :  { %v1207_v22 = vpop.xlane.xlu1 %1206 }
 0xf3d   :  { %v1209_v7 = vmul.f32 %v1207_v22, %v1894_v54 }
 0xf3f   :  { %v1211_v40 = vsub.f32 %v1201_v9, %v1209_v7 }
 0xf41   :  { %v1213_v23 = vmul.f32 %v1211_v40, %v1211_v40 }
 0xf43   :  { %v1217_v24 = vsel %vm137_vm1, %v1213_v23, 0.0  ;;  %v1554_v23 = vld [vmem:[%s2411_s7 + $0x48] sm:$0xff] }
 0xf44   :  { %1218 = vadd.xlane.f32.xlu0 %v1217_v24  ;;  %1405 = vmatpush.msrb.mxu3 %v1554_v23 }
 0xf46   :  { %1406 = vmatpush.msrb.mxu3 %v1553_v27 }
 0xfac   :  { %v1216_v29 = vpop.xlane.xlu2 %1215 }
 0xfad   :  { %v1220_v30 = vmul.f32 %v1216_v29, %v1894_v54 }
 0xfaf   :  { %v1222_v32 = vadd.f32 1e-05, %v1220_v30 }
 0xfb1   :  { %1671 = vrsqrt.f32 %v1222_v32  ;;  %vm1230_vm2 = vweird.f32 %v1222_v32 }
 0xfb7   :  { %v1672_v33 = vpop.eup %1671  ;;  %v1219_v34 = vpop.xlane.xlu0 %1218 }
 0xfb8   :  { %v1225_v11 = vmul.f32 %v1672_v33, %v1222_v32  ;;  %v1221_v35 = vmul.f32 %v1219_v34, %v1894_v54  ;;  %vm1231_vm15 = vweird.f32 %v1672_v33 }
 0xfb9   :  { %vm1232_vm11 = vmor %vm1230_vm2, %vm1231_vm15  ;;  %vm2439_vm15 = vcmask 523264  }
 0xfba   :  { %v1226_v5 = vmul.f32 %v1672_v33, %v1225_v11  ;;  %v1223_v36 = vadd.f32 1e-05, %v1221_v35 }
 0xfbc   :  { %v1227_v16 = vmul.f32 0.5, %v1226_v5  ;;  %1673 = vrsqrt.f32 %v1223_v36  ;;  %vm1240_vm3 = vweird.f32 %v1223_v36 }
 0xfbe   :  { %v1228_v46 = vsub.f32 1.5, %v1227_v16 }
 0xfc0   :  { %v1229_v37 = vmul.f32 %v1672_v33, %v1228_v46 }
 0xfc2   :  { %v1674_v38 = vpop.eup %1673  ;;  %v1233_v39 = vsel %vm1232_vm11, %v1672_v33, %v1229_v37  ;;  %vm2440_vm11 = vmmov %vm2439_vm15 }
 0xfc3   :  { %v1244_v41 = vmul.f32 %v1233_v39, %v1210_v18  ;;  %v1235_v26 = vmul.f32 %v1674_v38, %v1223_v36  ;;  %vm1241_vm14 = vweird.f32 %v1674_v38 }
 0xfc4   :  { %vm1242_vm6 = vmor %vm1240_vm3, %vm1241_vm14  ;;  %vm1475_vm3 = vcmask 74752  }
 0xfc5   :  { %v1247_v43 = vmul.f32 %v1606_v21, %v1244_v41  ;;  %v1236_v3 = vmul.f32 %v1674_v38, %v1235_v26 }
 0xfc7   :  { %v1237_v44 = vmul.f32 0.5, %v1236_v3  ;;  %v1250_v31 = vadd.f32 %v1607_v42, %v1247_v43 }
 0xfc9   :  { %v1238_v45 = vsub.f32 1.5, %v1237_v44  ;;  %1549 = vmatmul.msk.f32.vlgmr.msrb.gmra.mxu0 %vm133_vm0, %v1250_v31 }
 0xfcb   :  { %v1239_v47 = vmul.f32 %v1674_v38, %v1238_v45 }
 0xfcd   :  { %v1243_v48 = vsel %vm1242_vm6, %v1674_v38, %v1239_v47 }
 0xfce   :  { %v1245_v49 = vmul.f32 %v1243_v48, %v1211_v40 }
 0xfd0   :  { %v1248_v50 = vmul.f32 %v1606_v21, %v1245_v49 }
 0xfd2   :  { %v1251_v51 = vadd.f32 %v1607_v42, %v1248_v50 }
 0xfd4   :  { %1550 = vmatmul.msk.f32.gmra.mxu0 %vm133_vm0, %v1251_v51 }
0x1046   :  { %v1281_v53 = vpop.f32.mrf.mxu0 }
0x1047   :  { %v2326_v55 = vadd.f32 %v1608_v52, %v1281_v53 }
0x1049   :  { %v2329_v12 = vmul.f32 0.70710677, %v2326_v55 }
0x104b   :  { %v1291_v56 = vmul.f32 %v2329_v12, %v2329_v12 }
0x104d   :  { %v1292_v57 = vmin.f32 %v1291_v56, 16.0 }
0x104f   :  { %v1293_v59 = vmul.f32 2.1237322e-06, %v1292_v57  ;;  %v1304_v17 = vmul.f32 3.8918573e-05, %v1292_v57 }
0x1051   :  { %v1294_v61 = vadd.f32 0.00028619796, %v1293_v59  ;;  %v1305_v62 = vadd.f32 0.001143296, %v1304_v17  ;;  %v1284_v63 = vpop.f32.mrf.mxu0 }
0x1052   :  { %v2342_v1 = vadd.f32 %v1608_v52, %v1284_v63 }
0x1053   :  { %v1295_v6 = vmul.f32 %v1294_v61, %v1292_v57  ;;  %v1306_v4 = vmul.f32 %v1305_v62, %v1292_v57 }
0x1054   :  { %v2348_v9 = vmul.f32 0.70710677, %v2342_v1  ;;  %v1288_v23 = vmul.f32 0.5, %v2342_v1 }
0x1055   :  { %v1296_v10 = vadd.f32 0.0036580483, %v1295_v6  ;;  %v1307_v14 = vadd.f32 0.014752088, %v1306_v4  ;;  %v1287_v6 = vmul.f32 0.5, %v2326_v55 }
0x1056   :  { %v1331_v18 = vmul.f32 %v2348_v9, %v2348_v9 }
0x1057   :  { %v1308_v20 = vmul.f32 %v1307_v14, %v1292_v57  ;;  %v1297_v7 = vmul.f32 %v1296_v10, %v1292_v57 }
0x1058   :  { %v1332_v22 = vmin.f32 %v1331_v18, 16.0 }
0x1059   :  { %v1309_v40 = vadd.f32 0.112945676, %v1308_v20  ;;  %v1298_v30 = vadd.f32 0.05243302, %v1297_v7 }
0x105a   :  { %v1333_v24 = vmul.f32 2.1237322e-06, %v1332_v22  ;;  %v1344_v13 = vmul.f32 3.8918573e-05, %v1332_v22 }
0x105b   :  { %v1310_v25 = vmul.f32 %v1309_v40, %v1292_v57  ;;  %v1299_v5 = vmul.f32 %v1298_v30, %v1292_v57 }
0x105c   :  { %v1334_v28 = vadd.f32 0.00028619796, %v1333_v24  ;;  %v1345_v29 = vadd.f32 0.001143296, %v1344_v13 }
0x105d   :  { %v1311_v32 = vadd.f32 0.4994258, %v1310_v25  ;;  %v1300_v21 = vadd.f32 0.18741608, %v1299_v5  ;;  %v1609_v25 = vld [vmem:[%s2407_s3 + $0xf] ss:$0 sm:$0xff] }
0x105e   :  { %v1335_v33 = vmul.f32 %v1334_v28, %v1332_v22  ;;  %v1346_v34 = vmul.f32 %v1345_v29, %v1332_v22 }
0x105f   :  { %v1312_v11 = vmul.f32 %v1311_v32, %v1292_v57  ;;  %v1301_v42 = vmul.f32 %v1300_v21, %v1292_v57 }
0x1060   :  { %v1347_v35 = vadd.f32 0.014752088, %v1346_v34  ;;  %v1336_v16 = vadd.f32 0.0036580483, %v1335_v33 }
0x1061   :  { %v1313_v36 = vadd.f32 1.0, %v1312_v11  ;;  %v1302_v47 = vadd.f32 1.1283791, %v1301_v42 }
0x1062   :  { %v1348_v46 = vmul.f32 %v1347_v35, %v1332_v22  ;;  %v1337_v38 = vmul.f32 %v1336_v16, %v1332_v22  ;;  %v1447_v16 = vld [vmem:[%s2412_s8 + $0x8] sm:$0xff] }
0x1063   :  { %1675 = vrcp.f32 %v1313_v36  ;;  %v1325_v48 = vand.u32 2147483648, %v1313_v36  ;;  %v1323_v51 = vand.u32 2147483647, %v1313_v36  ;;  %vm1319_vm12 = vweird.f32 %v1313_v36 }
0x1064   :  { %v1349_v37 = vadd.f32 0.112945676, %v1348_v46  ;;  %v1338_v43 = vadd.f32 0.05243302, %v1337_v38  ;;  %v1303_v58 = vmul.f32 %v1302_v47, %v2329_v12  ;;  %v1446_v46 = vld [vmem:[%s2412_s8] sm:$0xff] }
0x1065   :  { %v1326_v53 = vor.u32 1.1754944e-38, %v1325_v48  ;;  %vm1324_vm8 = vcmp.eq.f32.partialorder %v1323_v51, 8.507059e+37 }
0x1066   :  { %v1350_v39 = vmul.f32 %v1349_v37, %v1332_v22  ;;  %v1339_v49 = vmul.f32 %v1338_v43, %v1332_v22 }
0x1068   :  { %v1351_v41 = vadd.f32 0.4994258, %v1350_v39  ;;  %v1340_v56 = vadd.f32 0.18741608, %v1339_v49  ;;  %v1612_v49 = vld [vmem:[%s2407_s3 + $0x12] ss:$0 sm:$0xff] }
0x1069   :  { %v1676_v26 = vpop.eup %1675 }
0x106a   :  { %v1315_v3 = vmul.f32 %v1676_v26, %v1313_v36  ;;  %v1352_v44 = vmul.f32 %v1351_v41, %v1332_v22  ;;  %vm1320_vm7 = vweird.f32 %v1676_v26  ;;  %v1341_v61 = vmul.f32 %v1340_v56, %v1332_v22  ;;  %v1449_v36 = vld [vmem:[%s2412_s8 + $0x18] sm:$0xff] }
0x106b   :  { %vm1321_vm13 = vmor %vm1319_vm12, %vm1320_vm7  ;;  %1467 = vmatpush.msra.mxu0 %v1449_v36 }
0x106c   :  { %v1316_v31 = vsub.f32 1.0, %v1315_v3  ;;  %v1353_v45 = vadd.f32 1.0, %v1352_v44  ;;  %v1342_v10 = vadd.f32 1.1283791, %v1341_v61  ;;  %v1610_v44 = vld [vmem:[%s2407_s3 + $0x10] ss:$0 sm:$0xff] }
0x106e   :  { %v1317_v50 = vmul.f32 %v1676_v26, %v1316_v31  ;;  %1677 = vrcp.f32 %v1353_v45  ;;  %v1365_v8 = vand.u32 2147483648, %v1353_v45  ;;  %v1363_v15 = vand.u32 2147483647, %v1353_v45 }
0x106f   :  { %vm1359_vm5 = vweird.f32 %v1353_v45  ;;  %v1343_v19 = vmul.f32 %v1342_v10, %v2348_v9 }
0x1070   :  { %v1318_v52 = vadd.f32 %v1676_v26, %v1317_v50  ;;  %v1366_v12 = vor.u32 1.1754944e-38, %v1365_v8  ;;  %vm1364_vm2 = vcmp.eq.f32.partialorder %v1363_v15, 8.507059e+37 }
0x1072   :  { %v1322_v57 = vsel %vm1321_vm13, %v1676_v26, %v1318_v52 }
0x1073   :  { %v1327_v59 = vsel %vm1324_vm8, %v1326_v53, %v1322_v57 }
0x1074   :  { %v1678_v17 = vpop.eup %1677  ;;  %v1328_v60 = vmul.f32 %v1327_v59, %v1303_v58 }
0x1075   :  { %v1355_v62 = vmul.f32 %v1678_v17, %v1353_v45  ;;  %vm1360_vm4 = vweird.f32 %v1678_v17 }
0x1076   :  { %v1551_v63 = vclamps-f32 %v1328_v60, 1.0  ;;  %vm1361_vm10 = vmor %vm1359_vm5, %vm1360_vm4 }
0x1077   :  { %v1356_v0 = vsub.f32 1.0, %v1355_v62 }
0x1078   :  { %v1371_v4 = vadd.f32 1.0, %v1551_v63 }
0x1079   :  { %v1357_v14 = vmul.f32 %v1678_v17, %v1356_v0 }
0x107a   :  { %v1373_v18 = vmul.f32 %v1371_v4, %v1287_v6 }
0x107b   :  { %v1358_v20 = vadd.f32 %v1678_v17, %v1357_v14 }
0x107c   :  { %1561 = vmatmul.msk.f32.vlgmr.msrb.gmra.mxu3 %vm2439_vm15, %v1373_v18 }
0x107d   :  { %v1362_v22 = vsel %vm1361_vm10, %v1678_v17, %v1358_v20 }
0x107e   :  { %v1367_v7 = vsel %vm1364_vm2, %v1366_v12, %v1362_v22 }
0x107f   :  { %v1368_v40 = vmul.f32 %v1367_v7, %v1343_v19 }
0x1081   :  { %v1552_v55 = vclamps-f32 %v1368_v40, 1.0 }
0x1083   :  { %v1372_v24 = vadd.f32 1.0, %v1552_v55 }
0x1085   :  { %v1374_v13 = vmul.f32 %v1372_v24, %v1288_v23 }
0x1087   :  { %1562 = vmatmul.msk.f32.gmra.mxu3 %vm2440_vm11, %v1374_v13 }
0x10ff   :  { %v1408_v27 = vpop.f32.mrf.mxu3 }
0x1100   :  { %v1409_v28 = vadd.f32 %v1609_v25, %v1408_v27 }
0x1102   :  { %v1413_v29 = vadd.f32 %v1409_v28, %v2290_v2  ;;  %v1448_v2 = vld [vmem:[%s2412_s8 + $0x10] sm:$0xff] }
0x1103   :  { %1468 = vmatpush.msra.mxu0 %v1448_v2 }
0x1104   :  { %v1415_v9 = vrot.slane %v1413_v29, 4 }
0x1105   :  { %1469 = vmatpush.msra.mxu0 %v1447_v16 }
0x1106   :  { %v1417_v30 = vsel %vm252_vm9, %v1413_v29, %v1415_v9 }
0x1107   :  { %v1420_v32 = vsel %vm137_vm1, %v1417_v30, 0.0  ;;  %1470 = vmatpush.msra.mxu0 %v1446_v46 }
0x1108   :  { %1421 = vadd.xlane.f32.xlu2 %v1420_v32 }
0x110a   :  { %v1411_v33 = vpop.f32.mrf.mxu3 }
0x117b   :  { %v1422_v1 = vpop.xlane.xlu2 %1421 }
0x117c   :  { %v1423_v34 = vmul.f32 %v1422_v1, %v1894_v54 }
0x117e   :  { %v1424_v11 = vsub.f32 %v1417_v30, %v1423_v34 }
0x1180   :  { %v1425_v35 = vmul.f32 %v1424_v11, %v1424_v11 }
0x1182   :  { %v1426_v5 = vsel %vm137_vm1, %v1425_v35, 0.0 }
0x1183   :  { %1427 = vadd.xlane.f32.xlu0 %v1426_v5 }
0x11f6   :  { %v1428_v37 = vpop.xlane.xlu0 %1427 }
0x11f7   :  { %v1429_v21 = vmul.f32 %v1428_v37, %v1894_v54  ;;  %v1611_v54 = vld [vmem:[%s2407_s3 + $0x11] ss:$0 sm:$0xff] }
0x11f9   :  { %v1430_v38 = vadd.f32 1e-05, %v1429_v21 }
0x11fb   :  { %1679 = vrsqrt.f32 %v1430_v38  ;;  %vm1437_vm9 = vweird.f32 %v1430_v38 }
0x1201   :  { %v1680_v39 = vpop.eup %1679 }
0x1202   :  { %v1432_v41 = vmul.f32 %v1680_v39, %v1430_v38  ;;  %vm1438_vm1 = vweird.f32 %v1680_v39 }
0x1203   :  { %vm1439_vm14 = vmor %vm1437_vm9, %vm1438_vm1 }
0x1204   :  { %v1433_v26 = vmul.f32 %v1680_v39, %v1432_v41 }
0x1206   :  { %v1434_v42 = vmul.f32 0.5, %v1433_v26 }
0x1208   :  { %v1435_v43 = vsub.f32 1.5, %v1434_v42 }
0x120a   :  { %v1436_v3 = vmul.f32 %v1680_v39, %v1435_v43 }
0x120c   :  { %v1440_v31 = vsel %vm1439_vm14, %v1680_v39, %v1436_v3 }
0x120d   :  { %v1441_v45 = vmul.f32 %v1440_v31, %v1424_v11 }
0x120f   :  { %v1443_v47 = vmul.f32 %v1610_v44, %v1441_v45 }
0x1211   :  { %v1445_v48 = vadd.f32 %v1611_v54, %v1443_v47 }
0x1213   :  { %1563 = vmatmul.msk.f32.vlgmr.msra.gmra.mxu0 %vm133_vm0, %v1445_v48 }
0x1290   :  { %v1472_v50 = vpop.f32.mrf.mxu0 }
0x1291   :  { %v1473_v51 = vadd.f32 %v1612_v49, %v1472_v50 }
0x1293   :  { %1476 = vst.msk [vmem:[#allocation2] sm:$0x3] %vm1475_vm3, %v1473_v51 }
0x1294   :  { %1487 = dma.vmem_to_hbm [thread:$0]  %s1483_s21, 32, %s1485_s11, [#allocation3]  }
0x1295   :  { %1705 = dma.done.wait [#allocation3], 32  }
0x1296   :  { %1706 = vsyncadd [#allocation3], 4294967264 }
0x1297   :  { %1492 = vsyncpa [#allocation3], 1 }

</bundles_post_ra>
